<compile_context>
chip_gen: v6e
topology: v6e:2x2x1
jax: 0.10.0
libtpu: 0.0.40
codegen_flags: <defaults>
</compile_context>

<pallas_src>
import functools

import jax
import jax.numpy as jnp
from jax.experimental import pallas as pl
from jax.experimental.pallas import tpu as pltpu


# ----------------------------------------------------------------------------
# helpers
# ----------------------------------------------------------------------------
def _round_up(x, m):
    return ((x + m - 1) // m) * m


def _pick_hw_tile(hw, cap=1024):
    """Largest multiple-of-8 divisor of hw that is <= cap (or hw itself if small / no divisor)."""
    if hw <= cap:
        return hw
    t = cap - (cap % 8)
    while t >= 8:
        if hw % t == 0:
            return t
        t -= 8
    return hw


# ----------------------------------------------------------------------------
# generic matmul + bias (+ optional fused sigmoid epilogue)  --  MXU, bf16 in / f32 acc
# ----------------------------------------------------------------------------
def _matmul_bias_kernel(x_ref, w_ref, b_ref, o_ref, *, activation):
    acc = jnp.dot(x_ref[...], w_ref[...], preferred_element_type=jnp.float32) + b_ref[...]
    if activation == "sigmoid":
        acc = jax.nn.sigmoid(acc)
    o_ref[...] = acc.astype(o_ref.dtype)


def matmul_bias(x, w, b, *, activation=None, out_dtype=jnp.bfloat16, tile_m=512):
    """y = act(x @ w + b); x:[M,K], w:[K,N], b:[N]."""
    M, K = x.shape
    _, N = w.shape
    tm = min(tile_m, _round_up(M, 8))
    Mp = _round_up(M, tm)
    if Mp != M:
        x = jnp.pad(x, ((0, Mp - M), (0, 0)))
    kernel = functools.partial(_matmul_bias_kernel, activation=activation)
    y = pl.pallas_call(
        kernel,
        out_shape=jax.ShapeDtypeStruct((Mp, N), out_dtype),
        grid=(Mp // tm,),
        in_specs=[
            pl.BlockSpec((tm, K), lambda i: (i, 0)),
            pl.BlockSpec((K, N), lambda i: (0, 0)),
            pl.BlockSpec((1, N), lambda i: (0, 0)),
        ],
        out_specs=pl.BlockSpec((tm, N), lambda i: (i, 0)),
        compiler_params=pltpu.CompilerParams(dimension_semantics=("parallel",)),
    )(x.astype(jnp.bfloat16), w.astype(jnp.bfloat16), b.reshape(1, N).astype(jnp.float32))
    return y[:M] if Mp != M else y


# ----------------------------------------------------------------------------
# conv3x3 ("same") fused with GroupNorm statistics
# ----------------------------------------------------------------------------
def _conv3x3_stats_kernel(x_ref, w_ref, b_ref, y_ref, s_ref, ss_ref, *, width):
    hw = y_ref.shape[1]
    cout = y_ref.shape[2]
    acc = jnp.zeros((hw, cout), jnp.float32)
    # 3 row taps as static row-offset slices of the padded-H flattened block.
    for di in range(3):
        lhs = x_ref[0, di * width: di * width + hw, :]
        acc += jnp.dot(lhs, w_ref[di], preferred_element_type=jnp.float32)
    y = acc + b_ref[...]
    y_ref[0] = y.astype(y_ref.dtype)
    # per-sample GroupNorm(num_groups=1) statistics, computed on the f32 result for free
    s_ref[...] = jnp.full(s_ref.shape, jnp.sum(y), jnp.float32)
    ss_ref[...] = jnp.full(ss_ref.shape, jnp.sum(y * y), jnp.float32)


def _gn_apply_kernel(y_ref, r_ref, g_ref, b_ref, s_ref, ss_ref, o_ref, *, n_elems, eps):
    mean = s_ref[0, 0, 0] / n_elems
    var = ss_ref[0, 0, 0] / n_elems - mean * mean
    var = jnp.maximum(var, 0.0)
    inv = jax.lax.rsqrt(var + eps)
    y = y_ref[0].astype(jnp.float32)
    yn = (y - mean) * inv * g_ref[0] + b_ref[0]
    o_ref[0] = (jnp.maximum(yn, 0.0) + r_ref[0].astype(jnp.float32)).astype(o_ref.dtype)


def conv3x3_gn_relu_res(x, w, b, gamma, beta):
    """relu(groupnorm(conv3x3_same(x))) + x ; x:[B,H,W,C] (bf16), w:[3,3,C,C]."""
    B, H, W, C = x.shape
    Cout = w.shape[-1]
    HW = H * W

    # width-direction tap concat (3x, done once in XLA), then pad H and flatten spatial rows.
    xw = jnp.pad(x, ((0, 0), (0, 0), (1, 1), (0, 0)))
    xcol = jnp.concatenate([xw[:, :, j:j + W, :] for j in range(3)], axis=-1)   # (B,H,W,3C)
    xcol = jnp.pad(xcol, ((0, 0), (1, 1), (0, 0), (0, 0)))                      # (B,H+2,W,3C)
    xcol = xcol.reshape(B, (H + 2) * W, 3 * C).astype(jnp.bfloat16)

    w3 = w.reshape(3, 3 * C, Cout).astype(jnp.bfloat16)
    b2 = b.reshape(1, Cout).astype(jnp.float32)

    conv_kernel = functools.partial(_conv3x3_stats_kernel, width=W)
    y, s, ss = pl.pallas_call(
        conv_kernel,
        out_shape=(
            jax.ShapeDtypeStruct((B, HW, Cout), jnp.bfloat16),
            jax.ShapeDtypeStruct((B, 1, 128), jnp.float32),
            jax.ShapeDtypeStruct((B, 1, 128), jnp.float32),
        ),
        grid=(B,),
        in_specs=[
            pl.BlockSpec((1, (H + 2) * W, 3 * C), lambda i: (i, 0, 0)),
            pl.BlockSpec((3, 3 * C, Cout), lambda i: (0, 0, 0)),
            pl.BlockSpec((1, Cout), lambda i: (0, 0)),
        ],
        out_specs=(
            pl.BlockSpec((1, HW, Cout), lambda i: (i, 0, 0)),
            pl.BlockSpec((1, 1, 128), lambda i: (i, 0, 0)),
            pl.BlockSpec((1, 1, 128), lambda i: (i, 0, 0)),
        ),
        compiler_params=pltpu.CompilerParams(dimension_semantics=("parallel",)),
    )(xcol, w3, b2)

    # GroupNorm apply + ReLU + residual, tiled over HW (bounded VMEM, pipelined).
    tile = _pick_hw_tile(HW)
    gn_kernel = functools.partial(_gn_apply_kernel, n_elems=float(HW * Cout), eps=1e-5)
    out = pl.pallas_call(
        gn_kernel,
        out_shape=jax.ShapeDtypeStruct((B, HW, Cout), jnp.bfloat16),
        grid=(B, HW // tile),
        in_specs=[
            pl.BlockSpec((1, tile, Cout), lambda bi, hi: (bi, hi, 0)),
            pl.BlockSpec((1, tile, Cout), lambda bi, hi: (bi, hi, 0)),
            pl.BlockSpec((1, 1, Cout), lambda bi, hi: (0, 0, 0)),
            pl.BlockSpec((1, 1, Cout), lambda bi, hi: (0, 0, 0)),
            pl.BlockSpec((1, 1, 128), lambda bi, hi: (bi, 0, 0)),
            pl.BlockSpec((1, 1, 128), lambda bi, hi: (bi, 0, 0)),
        ],
        out_specs=pl.BlockSpec((1, tile, Cout), lambda bi, hi: (bi, hi, 0)),
        compiler_params=pltpu.CompilerParams(dimension_semantics=("parallel", "parallel")),
    )(y, x.reshape(B, HW, C).astype(jnp.bfloat16),
      gamma.reshape(1, 1, Cout).astype(jnp.float32),
      beta.reshape(1, 1, Cout).astype(jnp.float32), s, ss)

    return out.reshape(B, H, W, Cout)


# ----------------------------------------------------------------------------
# 1x1 latent projection fused with reparameterization
# ----------------------------------------------------------------------------
def _latent_reparam_kernel(x_ref, w_ref, b_ref, e_ref, y_ref, z_ref):
    y = jnp.dot(x_ref[...], w_ref[...], preferred_element_type=jnp.float32) + b_ref[...]
    c = z_ref.shape[1]
    mu = y[:, :c]
    logvar = y[:, c:]
    z = mu + e_ref[...] * jnp.exp(logvar * 0.5)
    y_ref[...] = y
    z_ref[...] = z.astype(z_ref.dtype)


def latent_project_reparam(x, w, b, eps, tile_m=512):
    """1x1 conv (C -> 2C) + reparameterize; x:[B,h,w,C], w:[C,2C], eps:[B,h,w,C]."""
    B, h, wd, C = x.shape
    N = w.shape[1]
    M = B * h * wd
    x2 = x.reshape(M, C).astype(jnp.bfloat16)
    e2 = eps.reshape(M, C).astype(jnp.float32)
    tm = min(tile_m, _round_up(M, 8))
    Mp = _round_up(M, tm)
    if Mp != M:
        x2 = jnp.pad(x2, ((0, Mp - M), (0, 0)))
        e2 = jnp.pad(e2, ((0, Mp - M), (0, 0)))
    y, z = pl.pallas_call(
        _latent_reparam_kernel,
        out_shape=(jax.ShapeDtypeStruct((Mp, N), jnp.float32),
                   jax.ShapeDtypeStruct((Mp, C), jnp.bfloat16)),
        grid=(Mp // tm,),
        in_specs=[
            pl.BlockSpec((tm, C), lambda i: (i, 0)),
            pl.BlockSpec((C, N), lambda i: (0, 0)),
            pl.BlockSpec((1, N), lambda i: (0, 0)),
            pl.BlockSpec((tm, C), lambda i: (i, 0)),
        ],
        out_specs=(pl.BlockSpec((tm, N), lambda i: (i, 0)),
                   pl.BlockSpec((tm, C), lambda i: (i, 0))),
        compiler_params=pltpu.CompilerParams(dimension_semantics=("parallel",)),
    )(x2, w.astype(jnp.bfloat16), b.reshape(1, N).astype(jnp.float32), e2)
    if Mp != M:
        y, z = y[:M], z[:M]
    y = y.reshape(B, h, wd, N)
    z = z.reshape(B, h, wd, C)
    return z, y[..., :C], y[..., C:]


# ----------------------------------------------------------------------------
# strided / transposed convs (space-to-depth + Pallas matmul)
# ----------------------------------------------------------------------------
def conv2x2_stride2(x, w, b):
    """x:[B,H,W,Cin], w:[2,2,Cin,Cout] -> [B,H/2,W/2,Cout]."""
    B, H, W, C = x.shape
    Cout = w.shape[-1]
    xr = x.reshape(B, H // 2, 2, W // 2, 2, C).transpose(0, 1, 3, 2, 4, 5)
    xr = xr.reshape(B * (H // 2) * (W // 2), 4 * C)
    y = matmul_bias(xr, w.reshape(4 * C, Cout), b)
    return y.reshape(B, H // 2, W // 2, Cout)


def conv_transpose2x2_stride2(x, w, b, *, activation=None, out_dtype=jnp.bfloat16):
    """x:[B,H,W,Cin], w:[Cin,2,2,Cout] -> [B,2H,2W,Cout]; optional fused sigmoid epilogue."""
    B, H, W, C = x.shape
    Cout = w.shape[-1]
    y = matmul_bias(x.reshape(B * H * W, C), w.reshape(C, 4 * Cout), jnp.tile(b, 4),
                    activation=activation, out_dtype=out_dtype)
    y = y.reshape(B, H, W, 2, 2, Cout).transpose(0, 1, 3, 2, 4, 5)
    return y.reshape(B, 2 * H, 2 * W, Cout)


# ----------------------------------------------------------------------------
# VAE forward (matches the PyTorch module semantics)
# ----------------------------------------------------------------------------
def residual_block(x, p):
    return conv3x3_gn_relu_res(x, p["w"], p["b"], p["gamma"], p["beta"])


def encoder_block(x, p):
    x = conv2x2_stride2(x, p["proj_w"], p["proj_b"])
    for bp in p["blocks"]:
        x = residual_block(x, bp)
    return x


def decoder_block(x, p, *, final=False):
    for bp in p["blocks"]:
        x = residual_block(x, bp)
    x = conv_transpose2x2_stride2(
        x, p["proj_w"], p["proj_b"],
        activation="sigmoid" if final else None,
        out_dtype=jnp.float32 if final else jnp.bfloat16)
    return x


def vae_forward(params, x_nchw, eps_key):
    x = jnp.transpose(x_nchw, (0, 2, 3, 1)).astype(jnp.bfloat16)   # NCHW -> NHWC, bf16
    for ep in params["encoders"]:
        x = encoder_block(x, ep)

    eps = jax.random.normal(eps_key, x.shape, jnp.float32)
    z, mu, logvar = latent_project_reparam(x, params["latent_w"], params["latent_b"], eps)

    n_dec = len(params["decoders"])
    for i, dp in enumerate(params["decoders"]):
        z = decoder_block(z, dp, final=(i == n_dec - 1))

    out = jnp.transpose(z, (0, 3, 1, 2))                            # NHWC -> NCHW (f32, sigmoid'ed)
    mu_nchw = jnp.transpose(mu, (0, 3, 1, 2)).astype(jnp.float32)
    logvar_nchw = jnp.transpose(logvar, (0, 3, 1, 2)).astype(jnp.float32)
    return out, (mu_nchw, logvar_nchw)


# ----------------------------------------------------------------------------
# Deterministic parameter initialization (shapes from the module __init__)
# ----------------------------------------------------------------------------
def init_params(key, image_channels, layers):
    keys = iter(jax.random.split(key, 256))

    def rnd(shape, scale=0.1):
        return jax.random.normal(next(keys), shape, jnp.float32) * scale

    def res_block(c):
        return {
            "w": rnd((3, 3, c, c)),
            "b": rnd((c,)),
            "gamma": jnp.ones((c,), jnp.float32),
            "beta": jnp.zeros((c,), jnp.float32),
        }

    encoders, decoders = [], []
    in_ch = image_channels
    for out_ch, n_layers in layers:
        encoders.append({
            "proj_w": rnd((2, 2, in_ch, out_ch)),
            "proj_b": rnd((out_ch,)),
            "blocks": [res_block(out_ch) for _ in range(n_layers)],
        })
        decoders.append({
            "blocks": [res_block(out_ch) for _ in range(n_layers)],
            "proj_w": rnd((out_ch, 2, 2, in_ch)),   # ConvTranspose2d(out_ch -> in_ch)
            "proj_b": rnd((in_ch,)),
        })
        in_ch = out_ch

    return {
        "encoders": encoders,
        "decoders": list(reversed(decoders)),
        "latent_w": rnd((in_ch, 2 * in_ch)),
        "latent_b": rnd((2 * in_ch,)),
    }


if __name__ == "__main__":
    key = jax.random.PRNGKey(0)
    k_params, k_input, k_eps = jax.random.split(key, 3)

    image_channels = 4
    layers = [(8, 2), (16, 1)]  # (out_channels, n_layers) per block

    params = init_params(k_params, image_channels, layers)
    x = jax.random.normal(k_input, (2, image_channels, 16, 16), jnp.float32)

    fwd = jax.jit(functools.partial(vae_forward, params))
    out, (mu, logvar) = fwd(x, k_eps)
    jax.block_until_ready((out, mu, logvar))

    assert out.shape == (2, image_channels, 16, 16), out.shape
    assert mu.shape == (2, 16, 4, 4) and logvar.shape == (2, 16, 4, 4)
    assert bool(jnp.all(jnp.isfinite(out)))
    assert bool(jnp.all(out >= 0.0)) and bool(jnp.all(out <= 1.0))
    print("KERNEL_OK")
</pallas_src>

<mosaic_0001>
module attributes {stable_mosaic.version = 11 : i64} {
  func.func @_matmul_bias_kernel(%arg0: i32, %arg1: memref<128x16xbf16, #tpu.memory_space<vmem>>, %arg2: memref<16x8xbf16, #tpu.memory_space<vmem>>, %arg3: memref<1x8xf32, #tpu.memory_space<vmem>>, %arg4: memref<128x8xbf16, #tpu.memory_space<vmem>>) attributes {dimension_semantics = [#tpu.dimension_semantics<parallel>], iteration_bounds = array<i64: 1>, scalar_prefetch = 0 : i64, scratch_operands = 0 : i64, tpu.core_type = #tpu.core_type<tc>, window_params = [{transform_indices = @transform_0, window_bounds = array<i64: 128, 16>}, {pipeline_mode = #tpu.pipeline_mode<synchronous>, transform_indices = @transform_1, window_bounds = array<i64: 16, 8>}, {pipeline_mode = #tpu.pipeline_mode<synchronous>, transform_indices = @transform_2, window_bounds = array<i64: 1, 8>}, {transform_indices = @transform_3, window_bounds = array<i64: 128, 8>}]} {
    %c0 = arith.constant 0 : index
    %c0_0 = arith.constant 0 : index
    %0 = vector.load %arg1[%c0, %c0_0] : memref<128x16xbf16, #tpu.memory_space<vmem>>, vector<128x16xbf16>
    %c0_1 = arith.constant 0 : index
    %c0_2 = arith.constant 0 : index
    %1 = vector.load %arg2[%c0_1, %c0_2] : memref<16x8xbf16, #tpu.memory_space<vmem>>, vector<16x8xbf16>
    %cst = arith.constant dense<0.000000e+00> : vector<128x8xf32>
    %2 = tpu.matmul %0, %1, %cst {dimension_numbers = #tpu.dot_dimension_numbers<[1], [0], [0], [1], [0, 0, 1, 1], [], []>} : vector<128x16xbf16>, vector<16x8xbf16>, vector<128x8xf32> -> vector<128x8xf32>
    %c0_3 = arith.constant 0 : index
    %c0_4 = arith.constant 0 : index
    %3 = vector.load %arg3[%c0_3, %c0_4] : memref<1x8xf32, #tpu.memory_space<vmem>>, vector<1x8xf32>
    %4 = vector.broadcast %3 : vector<1x8xf32> to vector<128x8xf32>
    %5 = arith.addf %2, %4 : vector<128x8xf32>
    %6 = arith.truncf %5 : vector<128x8xf32> to vector<128x8xbf16>
    %c0_5 = arith.constant 0 : index
    %c0_6 = arith.constant 0 : index
    %7 = vector.load %arg4[%c0_5, %c0_6] : memref<128x8xbf16, #tpu.memory_space<vmem>>, vector<128x8xbf16>
    tpu.vector_store %arg4[%c0_5, %c0_6], %6 {strides = array<i32>} : memref<128x8xbf16, #tpu.memory_space<vmem>>, vector<128x8xbf16>,
    return
  }
  func.func @transform_0(%arg0: i32) -> (i32, i32) {
    %c0_i32 = arith.constant 0 : i32
    %c0_i32_0 = arith.constant 0 : i32
    return %arg0, %c0_i32 : i32, i32
  }
  func.func @transform_1(%arg0: i32) -> (i32, i32) {
    %c0_i32 = arith.constant 0 : i32
    %c0_i32_0 = arith.constant 0 : i32
    %c0_i32_1 = arith.constant 0 : i32
    return %c0_i32, %c0_i32_0 : i32, i32
  }
  func.func @transform_2(%arg0: i32) -> (i32, i32) {
    %c0_i32 = arith.constant 0 : i32
    %c0_i32_0 = arith.constant 0 : i32
    %c0_i32_1 = arith.constant 0 : i32
    return %c0_i32, %c0_i32_0 : i32, i32
  }
  func.func @transform_3(%arg0: i32) -> (i32, i32) {
    %c0_i32 = arith.constant 0 : i32
    %c0_i32_0 = arith.constant 0 : i32
    return %arg0, %c0_i32 : i32, i32
  }
}

module attributes {stable_mosaic.version = 11 : i64} {
  func.func @_conv3x3_stats_kernel(%arg0: i32, %arg1: memref<1x80x24xbf16, #tpu.memory_space<vmem>>, %arg2: memref<3x24x8xbf16, #tpu.memory_space<vmem>>, %arg3: memref<1x8xf32, #tpu.memory_space<vmem>>, %arg4: memref<1x64x8xbf16, #tpu.memory_space<vmem>>, %arg5: memref<1x1x128xf32, #tpu.memory_space<vmem>>, %arg6: memref<1x1x128xf32, #tpu.memory_space<vmem>>) attributes {dimension_semantics = [#tpu.dimension_semantics<parallel>], iteration_bounds = array<i64: 2>, scalar_prefetch = 0 : i64, scratch_operands = 0 : i64, tpu.core_type = #tpu.core_type<tc>, window_params = [{transform_indices = @transform_0, window_bounds = array<i64: 1, 80, 24>}, {pipeline_mode = #tpu.pipeline_mode<synchronous>, transform_indices = @transform_1, window_bounds = array<i64: 3, 24, 8>}, {pipeline_mode = #tpu.pipeline_mode<synchronous>, transform_indices = @transform_2, window_bounds = array<i64: 1, 8>}, {transform_indices = @transform_3, window_bounds = array<i64: 1, 64, 8>}, {transform_indices = @transform_4, window_bounds = array<i64: 1, 1, 128>}, {transform_indices = @transform_5, window_bounds = array<i64: 1, 1, 128>}]} {
    %cst = arith.constant 0.000000e+00 : f32
    %0 = vector.broadcast %cst : f32 to vector<64x8xf32>
    %c0 = arith.constant 0 : index
    %c0_0 = arith.constant 0 : index
    %c0_1 = arith.constant 0 : index
    %1 = vector.load %arg1[%c0, %c0_0, %c0_1] : memref<1x80x24xbf16, #tpu.memory_space<vmem>>, vector<1x64x24xbf16>
    %2 = vector.shape_cast %1 : vector<1x64x24xbf16> to vector<64x24xbf16>
    %c0_2 = arith.constant 0 : index
    %c0_3 = arith.constant 0 : index
    %c0_4 = arith.constant 0 : index
    %3 = vector.load %arg2[%c0_2, %c0_3, %c0_4] : memref<3x24x8xbf16, #tpu.memory_space<vmem>>, vector<1x24x8xbf16>
    %4 = vector.shape_cast %3 : vector<1x24x8xbf16> to vector<24x8xbf16>
    %cst_5 = arith.constant dense<0.000000e+00> : vector<64x8xf32>
    %5 = tpu.matmul %2, %4, %cst_5 {dimension_numbers = #tpu.dot_dimension_numbers<[1], [0], [0], [1], [0, 0, 1, 1], [], []>} : vector<64x24xbf16>, vector<24x8xbf16>, vector<64x8xf32> -> vector<64x8xf32>
    %6 = arith.addf %0, %5 : vector<64x8xf32>
    %c0_6 = arith.constant 0 : index
    %c8 = arith.constant 8 : index
    %c0_7 = arith.constant 0 : index
    %7 = vector.load %arg1[%c0_6, %c8, %c0_7] : memref<1x80x24xbf16, #tpu.memory_space<vmem>>, vector<1x64x24xbf16>
    %8 = vector.shape_cast %7 : vector<1x64x24xbf16> to vector<64x24xbf16>
    %c1 = arith.constant 1 : index
    %c0_8 = arith.constant 0 : index
    %c0_9 = arith.constant 0 : index
    %9 = vector.load %arg2[%c1, %c0_8, %c0_9] : memref<3x24x8xbf16, #tpu.memory_space<vmem>>, vector<1x24x8xbf16>
    %10 = vector.shape_cast %9 : vector<1x24x8xbf16> to vector<24x8xbf16>
    %cst_10 = arith.constant dense<0.000000e+00> : vector<64x8xf32>
    %11 = tpu.matmul %8, %10, %cst_10 {dimension_numbers = #tpu.dot_dimension_numbers<[1], [0], [0], [1], [0, 0, 1, 1], [], []>} : vector<64x24xbf16>, vector<24x8xbf16>, vector<64x8xf32> -> vector<64x8xf32>
    %12 = arith.addf %6, %11 : vector<64x8xf32>
    %c0_11 = arith.constant 0 : index
    %c16 = arith.constant 16 : index
    %c0_12 = arith.constant 0 : index
    %13 = vector.load %arg1[%c0_11, %c16, %c0_12] : memref<1x80x24xbf16, #tpu.memory_space<vmem>>, vector<1x64x24xbf16>
    %14 = vector.shape_cast %13 : vector<1x64x24xbf16> to vector<64x24xbf16>
    %c2 = arith.constant 2 : index
    %c0_13 = arith.constant 0 : index
    %c0_14 = arith.constant 0 : index
    %15 = vector.load %arg2[%c2, %c0_13, %c0_14] : memref<3x24x8xbf16, #tpu.memory_space<vmem>>, vector<1x24x8xbf16>
    %16 = vector.shape_cast %15 : vector<1x24x8xbf16> to vector<24x8xbf16>
    %cst_15 = arith.constant dense<0.000000e+00> : vector<64x8xf32>
    %17 = tpu.matmul %14, %16, %cst_15 {dimension_numbers = #tpu.dot_dimension_numbers<[1], [0], [0], [1], [0, 0, 1, 1], [], []>} : vector<64x24xbf16>, vector<24x8xbf16>, vector<64x8xf32> -> vector<64x8xf32>
    %18 = arith.addf %12, %17 : vector<64x8xf32>
    %c0_16 = arith.constant 0 : index
    %c0_17 = arith.constant 0 : index
    %19 = vector.load %arg3[%c0_16, %c0_17] : memref<1x8xf32, #tpu.memory_space<vmem>>, vector<1x8xf32>
    %20 = vector.broadcast %19 : vector<1x8xf32> to vector<64x8xf32>
    %21 = arith.addf %18, %20 : vector<64x8xf32>
    %22 = arith.truncf %21 : vector<64x8xf32> to vector<64x8xbf16>
    %c0_18 = arith.constant 0 : index
    %c0_19 = arith.constant 0 : index
    %c0_20 = arith.constant 0 : index
    %23 = vector.load %arg4[%c0_18, %c0_19, %c0_20] : memref<1x64x8xbf16, #tpu.memory_space<vmem>>, vector<1x64x8xbf16>
    %24 = vector.shape_cast %23 : vector<1x64x8xbf16> to vector<64x8xbf16>
    %25 = vector.shape_cast %22 : vector<64x8xbf16> to vector<1x64x8xbf16>
    tpu.vector_store %arg4[%c0_18, %c0_19, %c0_20], %25 {strides = array<i32>} : memref<1x64x8xbf16, #tpu.memory_space<vmem>>, vector<1x64x8xbf16>,
    %26 = vector.shape_cast %21 : vector<64x8xf32> to vector<1x64x8xf32>
    %cst_21 = arith.constant dense<0.000000e+00> : vector<1xf32>
    %27 = vector.multi_reduction <add>, %26, %cst_21 [1, 2] : vector<1x64x8xf32> to vector<1xf32>
    %28 = vector.shape_cast %27 : vector<1xf32> to vector<1x1x1xf32>
    %29 = vector.extract %28[0, 0, 0] : f32 from vector<1x1x1xf32>
    %30 = vector.broadcast %29 : f32 to vector<1x1x128xf32>
    %c0_22 = arith.constant 0 : index
    %c0_23 = arith.constant 0 : index
    %c0_24 = arith.constant 0 : index
    %31 = vector.load %arg5[%c0_22, %c0_23, %c0_24] : memref<1x1x128xf32, #tpu.memory_space<vmem>>, vector<1x1x128xf32>
    tpu.vector_store %arg5[%c0_22, %c0_23, %c0_24], %30 {strides = array<i32>} : memref<1x1x128xf32, #tpu.memory_space<vmem>>, vector<1x1x128xf32>,
    %32 = arith.mulf %21, %21 : vector<64x8xf32>
    %33 = vector.shape_cast %32 : vector<64x8xf32> to vector<1x64x8xf32>
    %cst_25 = arith.constant dense<0.000000e+00> : vector<1xf32>
    %34 = vector.multi_reduction <add>, %33, %cst_25 [1, 2] : vector<1x64x8xf32> to vector<1xf32>
    %35 = vector.shape_cast %34 : vector<1xf32> to vector<1x1x1xf32>
    %36 = vector.extract %35[0, 0, 0] : f32 from vector<1x1x1xf32>
    %37 = vector.broadcast %36 : f32 to vector<1x1x128xf32>
    %c0_26 = arith.constant 0 : index
    %c0_27 = arith.constant 0 : index
    %c0_28 = arith.constant 0 : index
    %38 = vector.load %arg6[%c0_26, %c0_27, %c0_28] : memref<1x1x128xf32, #tpu.memory_space<vmem>>, vector<1x1x128xf32>
    tpu.vector_store %arg6[%c0_26, %c0_27, %c0_28], %37 {strides = array<i32>} : memref<1x1x128xf32, #tpu.memory_space<vmem>>, vector<1x1x128xf32>,
    return
  }
  func.func @transform_0(%arg0: i32) -> (i32, i32, i32) {
    %c0_i32 = arith.constant 0 : i32
    %c0_i32_0 = arith.constant 0 : i32
    %c0_i32_1 = arith.constant 0 : i32
    return %arg0, %c0_i32, %c0_i32_0 : i32, i32, i32
  }
  func.func @transform_1(%arg0: i32) -> (i32, i32, i32) {
    %c0_i32 = arith.constant 0 : i32
    %c0_i32_0 = arith.constant 0 : i32
    %c0_i32_1 = arith.constant 0 : i32
    %c0_i32_2 = arith.constant 0 : i32
    return %c0_i32, %c0_i32_0, %c0_i32_1 : i32, i32, i32
  }
  func.func @transform_2(%arg0: i32) -> (i32, i32) {
    %c0_i32 = arith.constant 0 : i32
    %c0_i32_0 = arith.constant 0 : i32
    %c0_i32_1 = arith.constant 0 : i32
    return %c0_i32, %c0_i32_0 : i32, i32
  }
  func.func @transform_3(%arg0: i32) -> (i32, i32, i32) {
    %c0_i32 = arith.constant 0 : i32
    %c0_i32_0 = arith.constant 0 : i32
    %c0_i32_1 = arith.constant 0 : i32
    return %arg0, %c0_i32, %c0_i32_0 : i32, i32, i32
  }
  func.func @transform_4(%arg0: i32) -> (i32, i32, i32) {
    %c0_i32 = arith.constant 0 : i32
    %c0_i32_0 = arith.constant 0 : i32
    %c0_i32_1 = arith.constant 0 : i32
    return %arg0, %c0_i32, %c0_i32_0 : i32, i32, i32
  }
  func.func @transform_5(%arg0: i32) -> (i32, i32, i32) {
    %c0_i32 = arith.constant 0 : i32
    %c0_i32_0 = arith.constant 0 : i32
    %c0_i32_1 = arith.constant 0 : i32
    return %arg0, %c0_i32, %c0_i32_0 : i32, i32, i32
  }
}

module attributes {stable_mosaic.version = 11 : i64} {
  func.func @_gn_apply_kernel(%arg0: i32, %arg1: i32, %arg2: memref<1x64x8xbf16, #tpu.memory_space<vmem>>, %arg3: memref<1x64x8xbf16, #tpu.memory_space<vmem>>, %arg4: memref<1x1x8xf32, #tpu.memory_space<vmem>>, %arg5: memref<1x1x8xf32, #tpu.memory_space<vmem>>, %arg6: memref<1x1x128xf32, #tpu.memory_space<vmem>>, %arg7: memref<1x1x128xf32, #tpu.memory_space<vmem>>, %arg8: memref<1x64x8xbf16, #tpu.memory_space<vmem>>) attributes {dimension_semantics = [#tpu.dimension_semantics<parallel>, #tpu.dimension_semantics<parallel>], iteration_bounds = array<i64: 2, 1>, scalar_prefetch = 0 : i64, scratch_operands = 0 : i64, tpu.core_type = #tpu.core_type<tc>, window_params = [{transform_indices = @transform_0, window_bounds = array<i64: 1, 64, 8>}, {transform_indices = @transform_1, window_bounds = array<i64: 1, 64, 8>}, {pipeline_mode = #tpu.pipeline_mode<synchronous>, transform_indices = @transform_2, window_bounds = array<i64: 1, 1, 8>}, {pipeline_mode = #tpu.pipeline_mode<synchronous>, transform_indices = @transform_3, window_bounds = array<i64: 1, 1, 8>}, {transform_indices = @transform_4, window_bounds = array<i64: 1, 1, 128>}, {transform_indices = @transform_5, window_bounds = array<i64: 1, 1, 128>}, {transform_indices = @transform_6, window_bounds = array<i64: 1, 64, 8>}]} {
    %c0 = arith.constant 0 : index
    %c0_0 = arith.constant 0 : index
    %c0_1 = arith.constant 0 : index
    %0 = vector.load %arg6[%c0, %c0_0, %c0_1] : memref<1x1x128xf32, #tpu.memory_space<vmem>>, vector<1x1x1xf32>
    %1 = vector.extract %0[0, 0, 0] : f32 from vector<1x1x1xf32>
    %cst = arith.constant 5.120000e+02 : f32
    %2 = arith.divf %1, %cst : f32
    %c0_2 = arith.constant 0 : index
    %c0_3 = arith.constant 0 : index
    %c0_4 = arith.constant 0 : index
    %3 = vector.load %arg7[%c0_2, %c0_3, %c0_4] : memref<1x1x128xf32, #tpu.memory_space<vmem>>, vector<1x1x1xf32>
    %4 = vector.extract %3[0, 0, 0] : f32 from vector<1x1x1xf32>
    %cst_5 = arith.constant 5.120000e+02 : f32
    %5 = arith.divf %4, %cst_5 : f32
    %6 = arith.mulf %2, %2 : f32
    %7 = arith.subf %5, %6 : f32
    %cst_6 = arith.constant 0.000000e+00 : f32
    %8 = arith.maximumf %7, %cst_6 : f32
    %cst_7 = arith.constant 9.99999974E-6 : f32
    %9 = arith.addf %8, %cst_7 : f32
    %10 = math.rsqrt %9 : f32
    %c0_8 = arith.constant 0 : index
    %c0_9 = arith.constant 0 : index
    %c0_10 = arith.constant 0 : index
    %11 = vector.load %arg2[%c0_8, %c0_9, %c0_10] : memref<1x64x8xbf16, #tpu.memory_space<vmem>>, vector<1x64x8xbf16>
    %12 = vector.shape_cast %11 : vector<1x64x8xbf16> to vector<64x8xbf16>
    %13 = arith.extf %12 : vector<64x8xbf16> to vector<64x8xf32>
    %14 = vector.broadcast %2 : f32 to vector<64x8xf32>
    %15 = arith.subf %13, %14 : vector<64x8xf32>
    %16 = vector.broadcast %10 : f32 to vector<64x8xf32>
    %17 = arith.mulf %15, %16 : vector<64x8xf32>
    %c0_11 = arith.constant 0 : index
    %c0_12 = arith.constant 0 : index
    %c0_13 = arith.constant 0 : index
    %18 = vector.load %arg4[%c0_11, %c0_12, %c0_13] : memref<1x1x8xf32, #tpu.memory_space<vmem>>, vector<1x1x8xf32>
    %19 = vector.shape_cast %18 : vector<1x1x8xf32> to vector<1x8xf32>
    %20 = vector.broadcast %19 : vector<1x8xf32> to vector<64x8xf32>
    %21 = arith.mulf %17, %20 : vector<64x8xf32>
    %c0_14 = arith.constant 0 : index
    %c0_15 = arith.constant 0 : index
    %c0_16 = arith.constant 0 : index
    %22 = vector.load %arg5[%c0_14, %c0_15, %c0_16] : memref<1x1x8xf32, #tpu.memory_space<vmem>>, vector<1x1x8xf32>
    %23 = vector.shape_cast %22 : vector<1x1x8xf32> to vector<1x8xf32>
    %24 = vector.broadcast %23 : vector<1x8xf32> to vector<64x8xf32>
    %25 = arith.addf %21, %24 : vector<64x8xf32>
    %cst_17 = arith.constant 0.000000e+00 : f32
    %26 = vector.broadcast %cst_17 : f32 to vector<64x8xf32>
    %27 = arith.maximumf %25, %26 : vector<64x8xf32>
    %c0_18 = arith.constant 0 : index
    %c0_19 = arith.constant 0 : index
    %c0_20 = arith.constant 0 : index
    %28 = vector.load %arg3[%c0_18, %c0_19, %c0_20] : memref<1x64x8xbf16, #tpu.memory_space<vmem>>, vector<1x64x8xbf16>
    %29 = vector.shape_cast %28 : vector<1x64x8xbf16> to vector<64x8xbf16>
    %30 = arith.extf %29 : vector<64x8xbf16> to vector<64x8xf32>
    %31 = arith.addf %27, %30 : vector<64x8xf32>
    %32 = arith.truncf %31 : vector<64x8xf32> to vector<64x8xbf16>
    %c0_21 = arith.constant 0 : index
    %c0_22 = arith.constant 0 : index
    %c0_23 = arith.constant 0 : index
    %33 = vector.load %arg8[%c0_21, %c0_22, %c0_23] : memref<1x64x8xbf16, #tpu.memory_space<vmem>>, vector<1x64x8xbf16>
    %34 = vector.shape_cast %33 : vector<1x64x8xbf16> to vector<64x8xbf16>
    %35 = vector.shape_cast %32 : vector<64x8xbf16> to vector<1x64x8xbf16>
    tpu.vector_store %arg8[%c0_21, %c0_22, %c0_23], %35 {strides = array<i32>} : memref<1x64x8xbf16, #tpu.memory_space<vmem>>, vector<1x64x8xbf16>,
    return
  }
  func.func @transform_0(%arg0: i32, %arg1: i32) -> (i32, i32, i32) {
    %c0_i32 = arith.constant 0 : i32
    %c0_i32_0 = arith.constant 0 : i32
    return %arg0, %arg1, %c0_i32 : i32, i32, i32
  }
  func.func @transform_1(%arg0: i32, %arg1: i32) -> (i32, i32, i32) {
    %c0_i32 = arith.constant 0 : i32
    %c0_i32_0 = arith.constant 0 : i32
    return %arg0, %arg1, %c0_i32 : i32, i32, i32
  }
  func.func @transform_2(%arg0: i32, %arg1: i32) -> (i32, i32, i32) {
    %c0_i32 = arith.constant 0 : i32
    %c0_i32_0 = arith.constant 0 : i32
    %c0_i32_1 = arith.constant 0 : i32
    %c0_i32_2 = arith.constant 0 : i32
    return %c0_i32, %c0_i32_0, %c0_i32_1 : i32, i32, i32
  }
  func.func @transform_3(%arg0: i32, %arg1: i32) -> (i32, i32, i32) {
    %c0_i32 = arith.constant 0 : i32
    %c0_i32_0 = arith.constant 0 : i32
    %c0_i32_1 = arith.constant 0 : i32
    %c0_i32_2 = arith.constant 0 : i32
    return %c0_i32, %c0_i32_0, %c0_i32_1 : i32, i32, i32
  }
  func.func @transform_4(%arg0: i32, %arg1: i32) -> (i32, i32, i32) {
    %c0_i32 = arith.constant 0 : i32
    %c0_i32_0 = arith.constant 0 : i32
    %c0_i32_1 = arith.constant 0 : i32
    return %arg0, %c0_i32, %c0_i32_0 : i32, i32, i32
  }
  func.func @transform_5(%arg0: i32, %arg1: i32) -> (i32, i32, i32) {
    %c0_i32 = arith.constant 0 : i32
    %c0_i32_0 = arith.constant 0 : i32
    %c0_i32_1 = arith.constant 0 : i32
    return %arg0, %c0_i32, %c0_i32_0 : i32, i32, i32
  }
  func.func @transform_6(%arg0: i32, %arg1: i32) -> (i32, i32, i32) {
    %c0_i32 = arith.constant 0 : i32
    %c0_i32_0 = arith.constant 0 : i32
    return %arg0, %arg1, %c0_i32 : i32, i32, i32
  }
}

module attributes {stable_mosaic.version = 11 : i64} {
  func.func @_matmul_bias_kernel(%arg0: i32, %arg1: memref<32x32xbf16, #tpu.memory_space<vmem>>, %arg2: memref<32x16xbf16, #tpu.memory_space<vmem>>, %arg3: memref<1x16xf32, #tpu.memory_space<vmem>>, %arg4: memref<32x16xbf16, #tpu.memory_space<vmem>>) attributes {dimension_semantics = [#tpu.dimension_semantics<parallel>], iteration_bounds = array<i64: 1>, scalar_prefetch = 0 : i64, scratch_operands = 0 : i64, tpu.core_type = #tpu.core_type<tc>, window_params = [{transform_indices = @transform_0, window_bounds = array<i64: 32, 32>}, {pipeline_mode = #tpu.pipeline_mode<synchronous>, transform_indices = @transform_1, window_bounds = array<i64: 32, 16>}, {pipeline_mode = #tpu.pipeline_mode<synchronous>, transform_indices = @transform_2, window_bounds = array<i64: 1, 16>}, {transform_indices = @transform_3, window_bounds = array<i64: 32, 16>}]} {
    %c0 = arith.constant 0 : index
    %c0_0 = arith.constant 0 : index
    %0 = vector.load %arg1[%c0, %c0_0] : memref<32x32xbf16, #tpu.memory_space<vmem>>, vector<32x32xbf16>
    %c0_1 = arith.constant 0 : index
    %c0_2 = arith.constant 0 : index
    %1 = vector.load %arg2[%c0_1, %c0_2] : memref<32x16xbf16, #tpu.memory_space<vmem>>, vector<32x16xbf16>
    %cst = arith.constant dense<0.000000e+00> : vector<32x16xf32>
    %2 = tpu.matmul %0, %1, %cst {dimension_numbers = #tpu.dot_dimension_numbers<[1], [0], [0], [1], [0, 0, 1, 1], [], []>} : vector<32x32xbf16>, vector<32x16xbf16>, vector<32x16xf32> -> vector<32x16xf32>
    %c0_3 = arith.constant 0 : index
    %c0_4 = arith.constant 0 : index
    %3 = vector.load %arg3[%c0_3, %c0_4] : memref<1x16xf32, #tpu.memory_space<vmem>>, vector<1x16xf32>
    %4 = vector.broadcast %3 : vector<1x16xf32> to vector<32x16xf32>
    %5 = arith.addf %2, %4 : vector<32x16xf32>
    %6 = arith.truncf %5 : vector<32x16xf32> to vector<32x16xbf16>
    %c0_5 = arith.constant 0 : index
    %c0_6 = arith.constant 0 : index
    %7 = vector.load %arg4[%c0_5, %c0_6] : memref<32x16xbf16, #tpu.memory_space<vmem>>, vector<32x16xbf16>
    tpu.vector_store %arg4[%c0_5, %c0_6], %6 {strides = array<i32>} : memref<32x16xbf16, #tpu.memory_space<vmem>>, vector<32x16xbf16>,
    return
  }
  func.func @transform_0(%arg0: i32) -> (i32, i32) {
    %c0_i32 = arith.constant 0 : i32
    %c0_i32_0 = arith.constant 0 : i32
    return %arg0, %c0_i32 : i32, i32
  }
  func.func @transform_1(%arg0: i32) -> (i32, i32) {
    %c0_i32 = arith.constant 0 : i32
    %c0_i32_0 = arith.constant 0 : i32
    %c0_i32_1 = arith.constant 0 : i32
    return %c0_i32, %c0_i32_0 : i32, i32
  }
  func.func @transform_2(%arg0: i32) -> (i32, i32) {
    %c0_i32 = arith.constant 0 : i32
    %c0_i32_0 = arith.constant 0 : i32
    %c0_i32_1 = arith.constant 0 : i32
    return %c0_i32, %c0_i32_0 : i32, i32
  }
  func.func @transform_3(%arg0: i32) -> (i32, i32) {
    %c0_i32 = arith.constant 0 : i32
    %c0_i32_0 = arith.constant 0 : i32
    return %arg0, %c0_i32 : i32, i32
  }
}

module attributes {stable_mosaic.version = 11 : i64} {
  func.func @_conv3x3_stats_kernel(%arg0: i32, %arg1: memref<1x24x48xbf16, #tpu.memory_space<vmem>>, %arg2: memref<3x48x16xbf16, #tpu.memory_space<vmem>>, %arg3: memref<1x16xf32, #tpu.memory_space<vmem>>, %arg4: memref<1x16x16xbf16, #tpu.memory_space<vmem>>, %arg5: memref<1x1x128xf32, #tpu.memory_space<vmem>>, %arg6: memref<1x1x128xf32, #tpu.memory_space<vmem>>) attributes {dimension_semantics = [#tpu.dimension_semantics<parallel>], iteration_bounds = array<i64: 2>, scalar_prefetch = 0 : i64, scratch_operands = 0 : i64, tpu.core_type = #tpu.core_type<tc>, window_params = [{transform_indices = @transform_0, window_bounds = array<i64: 1, 24, 48>}, {pipeline_mode = #tpu.pipeline_mode<synchronous>, transform_indices = @transform_1, window_bounds = array<i64: 3, 48, 16>}, {pipeline_mode = #tpu.pipeline_mode<synchronous>, transform_indices = @transform_2, window_bounds = array<i64: 1, 16>}, {transform_indices = @transform_3, window_bounds = array<i64: 1, 16, 16>}, {transform_indices = @transform_4, window_bounds = array<i64: 1, 1, 128>}, {transform_indices = @transform_5, window_bounds = array<i64: 1, 1, 128>}]} {
    %cst = arith.constant 0.000000e+00 : f32
    %0 = vector.broadcast %cst : f32 to vector<16x16xf32>
    %c0 = arith.constant 0 : index
    %c0_0 = arith.constant 0 : index
    %c0_1 = arith.constant 0 : index
    %1 = vector.load %arg1[%c0, %c0_0, %c0_1] : memref<1x24x48xbf16, #tpu.memory_space<vmem>>, vector<1x16x48xbf16>
    %2 = vector.shape_cast %1 : vector<1x16x48xbf16> to vector<16x48xbf16>
    %c0_2 = arith.constant 0 : index
    %c0_3 = arith.constant 0 : index
    %c0_4 = arith.constant 0 : index
    %3 = vector.load %arg2[%c0_2, %c0_3, %c0_4] : memref<3x48x16xbf16, #tpu.memory_space<vmem>>, vector<1x48x16xbf16>
    %4 = vector.shape_cast %3 : vector<1x48x16xbf16> to vector<48x16xbf16>
    %cst_5 = arith.constant dense<0.000000e+00> : vector<16x16xf32>
    %5 = tpu.matmul %2, %4, %cst_5 {dimension_numbers = #tpu.dot_dimension_numbers<[1], [0], [0], [1], [0, 0, 1, 1], [], []>} : vector<16x48xbf16>, vector<48x16xbf16>, vector<16x16xf32> -> vector<16x16xf32>
    %6 = arith.addf %0, %5 : vector<16x16xf32>
    %c0_6 = arith.constant 0 : index
    %c4 = arith.constant 4 : index
    %c0_7 = arith.constant 0 : index
    %7 = vector.load %arg1[%c0_6, %c4, %c0_7] : memref<1x24x48xbf16, #tpu.memory_space<vmem>>, vector<1x16x48xbf16>
    %8 = vector.shape_cast %7 : vector<1x16x48xbf16> to vector<16x48xbf16>
    %c1 = arith.constant 1 : index
    %c0_8 = arith.constant 0 : index
    %c0_9 = arith.constant 0 : index
    %9 = vector.load %arg2[%c1, %c0_8, %c0_9] : memref<3x48x16xbf16, #tpu.memory_space<vmem>>, vector<1x48x16xbf16>
    %10 = vector.shape_cast %9 : vector<1x48x16xbf16> to vector<48x16xbf16>
    %cst_10 = arith.constant dense<0.000000e+00> : vector<16x16xf32>
    %11 = tpu.matmul %8, %10, %cst_10 {dimension_numbers = #tpu.dot_dimension_numbers<[1], [0], [0], [1], [0, 0, 1, 1], [], []>} : vector<16x48xbf16>, vector<48x16xbf16>, vector<16x16xf32> -> vector<16x16xf32>
    %12 = arith.addf %6, %11 : vector<16x16xf32>
    %c0_11 = arith.constant 0 : index
    %c8 = arith.constant 8 : index
    %c0_12 = arith.constant 0 : index
    %13 = vector.load %arg1[%c0_11, %c8, %c0_12] : memref<1x24x48xbf16, #tpu.memory_space<vmem>>, vector<1x16x48xbf16>
    %14 = vector.shape_cast %13 : vector<1x16x48xbf16> to vector<16x48xbf16>
    %c2 = arith.constant 2 : index
    %c0_13 = arith.constant 0 : index
    %c0_14 = arith.constant 0 : index
    %15 = vector.load %arg2[%c2, %c0_13, %c0_14] : memref<3x48x16xbf16, #tpu.memory_space<vmem>>, vector<1x48x16xbf16>
    %16 = vector.shape_cast %15 : vector<1x48x16xbf16> to vector<48x16xbf16>
    %cst_15 = arith.constant dense<0.000000e+00> : vector<16x16xf32>
    %17 = tpu.matmul %14, %16, %cst_15 {dimension_numbers = #tpu.dot_dimension_numbers<[1], [0], [0], [1], [0, 0, 1, 1], [], []>} : vector<16x48xbf16>, vector<48x16xbf16>, vector<16x16xf32> -> vector<16x16xf32>
    %18 = arith.addf %12, %17 : vector<16x16xf32>
    %c0_16 = arith.constant 0 : index
    %c0_17 = arith.constant 0 : index
    %19 = vector.load %arg3[%c0_16, %c0_17] : memref<1x16xf32, #tpu.memory_space<vmem>>, vector<1x16xf32>
    %20 = vector.broadcast %19 : vector<1x16xf32> to vector<16x16xf32>
    %21 = arith.addf %18, %20 : vector<16x16xf32>
    %22 = arith.truncf %21 : vector<16x16xf32> to vector<16x16xbf16>
    %c0_18 = arith.constant 0 : index
    %c0_19 = arith.constant 0 : index
    %c0_20 = arith.constant 0 : index
    %23 = vector.load %arg4[%c0_18, %c0_19, %c0_20] : memref<1x16x16xbf16, #tpu.memory_space<vmem>>, vector<1x16x16xbf16>
    %24 = vector.shape_cast %23 : vector<1x16x16xbf16> to vector<16x16xbf16>
    %25 = vector.shape_cast %22 : vector<16x16xbf16> to vector<1x16x16xbf16>
    tpu.vector_store %arg4[%c0_18, %c0_19, %c0_20], %25 {strides = array<i32>} : memref<1x16x16xbf16, #tpu.memory_space<vmem>>, vector<1x16x16xbf16>,
    %26 = vector.shape_cast %21 : vector<16x16xf32> to vector<1x16x16xf32>
    %cst_21 = arith.constant dense<0.000000e+00> : vector<1xf32>
    %27 = vector.multi_reduction <add>, %26, %cst_21 [1, 2] : vector<1x16x16xf32> to vector<1xf32>
    %28 = vector.shape_cast %27 : vector<1xf32> to vector<1x1x1xf32>
    %29 = vector.extract %28[0, 0, 0] : f32 from vector<1x1x1xf32>
    %30 = vector.broadcast %29 : f32 to vector<1x1x128xf32>
    %c0_22 = arith.constant 0 : index
    %c0_23 = arith.constant 0 : index
    %c0_24 = arith.constant 0 : index
    %31 = vector.load %arg5[%c0_22, %c0_23, %c0_24] : memref<1x1x128xf32, #tpu.memory_space<vmem>>, vector<1x1x128xf32>
    tpu.vector_store %arg5[%c0_22, %c0_23, %c0_24], %30 {strides = array<i32>} : memref<1x1x128xf32, #tpu.memory_space<vmem>>, vector<1x1x128xf32>,
    %32 = arith.mulf %21, %21 : vector<16x16xf32>
    %33 = vector.shape_cast %32 : vector<16x16xf32> to vector<1x16x16xf32>
    %cst_25 = arith.constant dense<0.000000e+00> : vector<1xf32>
    %34 = vector.multi_reduction <add>, %33, %cst_25 [1, 2] : vector<1x16x16xf32> to vector<1xf32>
    %35 = vector.shape_cast %34 : vector<1xf32> to vector<1x1x1xf32>
    %36 = vector.extract %35[0, 0, 0] : f32 from vector<1x1x1xf32>
    %37 = vector.broadcast %36 : f32 to vector<1x1x128xf32>
    %c0_26 = arith.constant 0 : index
    %c0_27 = arith.constant 0 : index
    %c0_28 = arith.constant 0 : index
    %38 = vector.load %arg6[%c0_26, %c0_27, %c0_28] : memref<1x1x128xf32, #tpu.memory_space<vmem>>, vector<1x1x128xf32>
    tpu.vector_store %arg6[%c0_26, %c0_27, %c0_28], %37 {strides = array<i32>} : memref<1x1x128xf32, #tpu.memory_space<vmem>>, vector<1x1x128xf32>,
    return
  }
  func.func @transform_0(%arg0: i32) -> (i32, i32, i32) {
    %c0_i32 = arith.constant 0 : i32
    %c0_i32_0 = arith.constant 0 : i32
    %c0_i32_1 = arith.constant 0 : i32
    return %arg0, %c0_i32, %c0_i32_0 : i32, i32, i32
  }
  func.func @transform_1(%arg0: i32) -> (i32, i32, i32) {
    %c0_i32 = arith.constant 0 : i32
    %c0_i32_0 = arith.constant 0 : i32
    %c0_i32_1 = arith.constant 0 : i32
    %c0_i32_2 = arith.constant 0 : i32
    return %c0_i32, %c0_i32_0, %c0_i32_1 : i32, i32, i32
  }
  func.func @transform_2(%arg0: i32) -> (i32, i32) {
    %c0_i32 = arith.constant 0 : i32
    %c0_i32_0 = arith.constant 0 : i32
    %c0_i32_1 = arith.constant 0 : i32
    return %c0_i32, %c0_i32_0 : i32, i32
  }
  func.func @transform_3(%arg0: i32) -> (i32, i32, i32) {
    %c0_i32 = arith.constant 0 : i32
    %c0_i32_0 = arith.constant 0 : i32
    %c0_i32_1 = arith.constant 0 : i32
    return %arg0, %c0_i32, %c0_i32_0 : i32, i32, i32
  }
  func.func @transform_4(%arg0: i32) -> (i32, i32, i32) {
    %c0_i32 = arith.constant 0 : i32
    %c0_i32_0 = arith.constant 0 : i32
    %c0_i32_1 = arith.constant 0 : i32
    return %arg0, %c0_i32, %c0_i32_0 : i32, i32, i32
  }
  func.func @transform_5(%arg0: i32) -> (i32, i32, i32) {
    %c0_i32 = arith.constant 0 : i32
    %c0_i32_0 = arith.constant 0 : i32
    %c0_i32_1 = arith.constant 0 : i32
    return %arg0, %c0_i32, %c0_i32_0 : i32, i32, i32
  }
}

module attributes {stable_mosaic.version = 11 : i64} {
  func.func @_gn_apply_kernel(%arg0: i32, %arg1: i32, %arg2: memref<1x16x16xbf16, #tpu.memory_space<vmem>>, %arg3: memref<1x16x16xbf16, #tpu.memory_space<vmem>>, %arg4: memref<1x1x16xf32, #tpu.memory_space<vmem>>, %arg5: memref<1x1x16xf32, #tpu.memory_space<vmem>>, %arg6: memref<1x1x128xf32, #tpu.memory_space<vmem>>, %arg7: memref<1x1x128xf32, #tpu.memory_space<vmem>>, %arg8: memref<1x16x16xbf16, #tpu.memory_space<vmem>>) attributes {dimension_semantics = [#tpu.dimension_semantics<parallel>, #tpu.dimension_semantics<parallel>], iteration_bounds = array<i64: 2, 1>, scalar_prefetch = 0 : i64, scratch_operands = 0 : i64, tpu.core_type = #tpu.core_type<tc>, window_params = [{transform_indices = @transform_0, window_bounds = array<i64: 1, 16, 16>}, {transform_indices = @transform_1, window_bounds = array<i64: 1, 16, 16>}, {pipeline_mode = #tpu.pipeline_mode<synchronous>, transform_indices = @transform_2, window_bounds = array<i64: 1, 1, 16>}, {pipeline_mode = #tpu.pipeline_mode<synchronous>, transform_indices = @transform_3, window_bounds = array<i64: 1, 1, 16>}, {transform_indices = @transform_4, window_bounds = array<i64: 1, 1, 128>}, {transform_indices = @transform_5, window_bounds = array<i64: 1, 1, 128>}, {transform_indices = @transform_6, window_bounds = array<i64: 1, 16, 16>}]} {
    %c0 = arith.constant 0 : index
    %c0_0 = arith.constant 0 : index
    %c0_1 = arith.constant 0 : index
    %0 = vector.load %arg6[%c0, %c0_0, %c0_1] : memref<1x1x128xf32, #tpu.memory_space<vmem>>, vector<1x1x1xf32>
    %1 = vector.extract %0[0, 0, 0] : f32 from vector<1x1x1xf32>
    %cst = arith.constant 2.560000e+02 : f32
    %2 = arith.divf %1, %cst : f32
    %c0_2 = arith.constant 0 : index
    %c0_3 = arith.constant 0 : index
    %c0_4 = arith.constant 0 : index
    %3 = vector.load %arg7[%c0_2, %c0_3, %c0_4] : memref<1x1x128xf32, #tpu.memory_space<vmem>>, vector<1x1x1xf32>
    %4 = vector.extract %3[0, 0, 0] : f32 from vector<1x1x1xf32>
    %cst_5 = arith.constant 2.560000e+02 : f32
    %5 = arith.divf %4, %cst_5 : f32
    %6 = arith.mulf %2, %2 : f32
    %7 = arith.subf %5, %6 : f32
    %cst_6 = arith.constant 0.000000e+00 : f32
    %8 = arith.maximumf %7, %cst_6 : f32
    %cst_7 = arith.constant 9.99999974E-6 : f32
    %9 = arith.addf %8, %cst_7 : f32
    %10 = math.rsqrt %9 : f32
    %c0_8 = arith.constant 0 : index
    %c0_9 = arith.constant 0 : index
    %c0_10 = arith.constant 0 : index
    %11 = vector.load %arg2[%c0_8, %c0_9, %c0_10] : memref<1x16x16xbf16, #tpu.memory_space<vmem>>, vector<1x16x16xbf16>
    %12 = vector.shape_cast %11 : vector<1x16x16xbf16> to vector<16x16xbf16>
    %13 = arith.extf %12 : vector<16x16xbf16> to vector<16x16xf32>
    %14 = vector.broadcast %2 : f32 to vector<16x16xf32>
    %15 = arith.subf %13, %14 : vector<16x16xf32>
    %16 = vector.broadcast %10 : f32 to vector<16x16xf32>
    %17 = arith.mulf %15, %16 : vector<16x16xf32>
    %c0_11 = arith.constant 0 : index
    %c0_12 = arith.constant 0 : index
    %c0_13 = arith.constant 0 : index
    %18 = vector.load %arg4[%c0_11, %c0_12, %c0_13] : memref<1x1x16xf32, #tpu.memory_space<vmem>>, vector<1x1x16xf32>
    %19 = vector.shape_cast %18 : vector<1x1x16xf32> to vector<1x16xf32>
    %20 = vector.broadcast %19 : vector<1x16xf32> to vector<16x16xf32>
    %21 = arith.mulf %17, %20 : vector<16x16xf32>
    %c0_14 = arith.constant 0 : index
    %c0_15 = arith.constant 0 : index
    %c0_16 = arith.constant 0 : index
    %22 = vector.load %arg5[%c0_14, %c0_15, %c0_16] : memref<1x1x16xf32, #tpu.memory_space<vmem>>, vector<1x1x16xf32>
    %23 = vector.shape_cast %22 : vector<1x1x16xf32> to vector<1x16xf32>
    %24 = vector.broadcast %23 : vector<1x16xf32> to vector<16x16xf32>
    %25 = arith.addf %21, %24 : vector<16x16xf32>
    %cst_17 = arith.constant 0.000000e+00 : f32
    %26 = vector.broadcast %cst_17 : f32 to vector<16x16xf32>
    %27 = arith.maximumf %25, %26 : vector<16x16xf32>
    %c0_18 = arith.constant 0 : index
    %c0_19 = arith.constant 0 : index
    %c0_20 = arith.constant 0 : index
    %28 = vector.load %arg3[%c0_18, %c0_19, %c0_20] : memref<1x16x16xbf16, #tpu.memory_space<vmem>>, vector<1x16x16xbf16>
    %29 = vector.shape_cast %28 : vector<1x16x16xbf16> to vector<16x16xbf16>
    %30 = arith.extf %29 : vector<16x16xbf16> to vector<16x16xf32>
    %31 = arith.addf %27, %30 : vector<16x16xf32>
    %32 = arith.truncf %31 : vector<16x16xf32> to vector<16x16xbf16>
    %c0_21 = arith.constant 0 : index
    %c0_22 = arith.constant 0 : index
    %c0_23 = arith.constant 0 : index
    %33 = vector.load %arg8[%c0_21, %c0_22, %c0_23] : memref<1x16x16xbf16, #tpu.memory_space<vmem>>, vector<1x16x16xbf16>
    %34 = vector.shape_cast %33 : vector<1x16x16xbf16> to vector<16x16xbf16>
    %35 = vector.shape_cast %32 : vector<16x16xbf16> to vector<1x16x16xbf16>
    tpu.vector_store %arg8[%c0_21, %c0_22, %c0_23], %35 {strides = array<i32>} : memref<1x16x16xbf16, #tpu.memory_space<vmem>>, vector<1x16x16xbf16>,
    return
  }
  func.func @transform_0(%arg0: i32, %arg1: i32) -> (i32, i32, i32) {
    %c0_i32 = arith.constant 0 : i32
    %c0_i32_0 = arith.constant 0 : i32
    return %arg0, %arg1, %c0_i32 : i32, i32, i32
  }
  func.func @transform_1(%arg0: i32, %arg1: i32) -> (i32, i32, i32) {
    %c0_i32 = arith.constant 0 : i32
    %c0_i32_0 = arith.constant 0 : i32
    return %arg0, %arg1, %c0_i32 : i32, i32, i32
  }
  func.func @transform_2(%arg0: i32, %arg1: i32) -> (i32, i32, i32) {
    %c0_i32 = arith.constant 0 : i32
    %c0_i32_0 = arith.constant 0 : i32
    %c0_i32_1 = arith.constant 0 : i32
    %c0_i32_2 = arith.constant 0 : i32
    return %c0_i32, %c0_i32_0, %c0_i32_1 : i32, i32, i32
  }
  func.func @transform_3(%arg0: i32, %arg1: i32) -> (i32, i32, i32) {
    %c0_i32 = arith.constant 0 : i32
    %c0_i32_0 = arith.constant 0 : i32
    %c0_i32_1 = arith.constant 0 : i32
    %c0_i32_2 = arith.constant 0 : i32
    return %c0_i32, %c0_i32_0, %c0_i32_1 : i32, i32, i32
  }
  func.func @transform_4(%arg0: i32, %arg1: i32) -> (i32, i32, i32) {
    %c0_i32 = arith.constant 0 : i32
    %c0_i32_0 = arith.constant 0 : i32
    %c0_i32_1 = arith.constant 0 : i32
    return %arg0, %c0_i32, %c0_i32_0 : i32, i32, i32
  }
  func.func @transform_5(%arg0: i32, %arg1: i32) -> (i32, i32, i32) {
    %c0_i32 = arith.constant 0 : i32
    %c0_i32_0 = arith.constant 0 : i32
    %c0_i32_1 = arith.constant 0 : i32
    return %arg0, %c0_i32, %c0_i32_0 : i32, i32, i32
  }
  func.func @transform_6(%arg0: i32, %arg1: i32) -> (i32, i32, i32) {
    %c0_i32 = arith.constant 0 : i32
    %c0_i32_0 = arith.constant 0 : i32
    return %arg0, %arg1, %c0_i32 : i32, i32, i32
  }
}

module attributes {stable_mosaic.version = 11 : i64} {
  func.func @_latent_reparam_kernel(%arg0: i32, %arg1: memref<32x16xbf16, #tpu.memory_space<vmem>>, %arg2: memref<16x32xbf16, #tpu.memory_space<vmem>>, %arg3: memref<1x32xf32, #tpu.memory_space<vmem>>, %arg4: memref<32x16xf32, #tpu.memory_space<vmem>>, %arg5: memref<32x32xf32, #tpu.memory_space<vmem>>, %arg6: memref<32x16xbf16, #tpu.memory_space<vmem>>) attributes {dimension_semantics = [#tpu.dimension_semantics<parallel>], iteration_bounds = array<i64: 1>, scalar_prefetch = 0 : i64, scratch_operands = 0 : i64, tpu.core_type = #tpu.core_type<tc>, window_params = [{transform_indices = @transform_0, window_bounds = array<i64: 32, 16>}, {pipeline_mode = #tpu.pipeline_mode<synchronous>, transform_indices = @transform_1, window_bounds = array<i64: 16, 32>}, {pipeline_mode = #tpu.pipeline_mode<synchronous>, transform_indices = @transform_2, window_bounds = array<i64: 1, 32>}, {transform_indices = @transform_3, window_bounds = array<i64: 32, 16>}, {transform_indices = @transform_4, window_bounds = array<i64: 32, 32>}, {transform_indices = @transform_5, window_bounds = array<i64: 32, 16>}]} {
    %c0 = arith.constant 0 : index
    %c0_0 = arith.constant 0 : index
    %0 = vector.load %arg1[%c0, %c0_0] : memref<32x16xbf16, #tpu.memory_space<vmem>>, vector<32x16xbf16>
    %c0_1 = arith.constant 0 : index
    %c0_2 = arith.constant 0 : index
    %1 = vector.load %arg2[%c0_1, %c0_2] : memref<16x32xbf16, #tpu.memory_space<vmem>>, vector<16x32xbf16>
    %cst = arith.constant dense<0.000000e+00> : vector<32x32xf32>
    %2 = tpu.matmul %0, %1, %cst {dimension_numbers = #tpu.dot_dimension_numbers<[1], [0], [0], [1], [0, 0, 1, 1], [], []>} : vector<32x16xbf16>, vector<16x32xbf16>, vector<32x32xf32> -> vector<32x32xf32>
    %c0_3 = arith.constant 0 : index
    %c0_4 = arith.constant 0 : index
    %3 = vector.load %arg3[%c0_3, %c0_4] : memref<1x32xf32, #tpu.memory_space<vmem>>, vector<1x32xf32>
    %4 = vector.broadcast %3 : vector<1x32xf32> to vector<32x32xf32>
    %5 = arith.addf %2, %4 : vector<32x32xf32>
    %6 = vector.extract_strided_slice %5 {offsets = [0, 0], sizes = [32, 16], strides = [1, 1]} : vector<32x32xf32> to vector<32x16xf32>
    %7 = vector.extract_strided_slice %5 {offsets = [0, 16], sizes = [32, 16], strides = [1, 1]} : vector<32x32xf32> to vector<32x16xf32>
    %c0_5 = arith.constant 0 : index
    %c0_6 = arith.constant 0 : index
    %8 = vector.load %arg4[%c0_5, %c0_6] : memref<32x16xf32, #tpu.memory_space<vmem>>, vector<32x16xf32>
    %cst_7 = arith.constant 5.000000e-01 : f32
    %9 = vector.broadcast %cst_7 : f32 to vector<32x16xf32>
    %10 = arith.mulf %7, %9 : vector<32x16xf32>
    %11 = math.exp %10 : vector<32x16xf32>
    %12 = arith.mulf %8, %11 : vector<32x16xf32>
    %13 = arith.addf %6, %12 : vector<32x16xf32>
    %c0_8 = arith.constant 0 : index
    %c0_9 = arith.constant 0 : index
    %14 = vector.load %arg5[%c0_8, %c0_9] : memref<32x32xf32, #tpu.memory_space<vmem>>, vector<32x32xf32>
    tpu.vector_store %arg5[%c0_8, %c0_9], %5 {strides = array<i32>} : memref<32x32xf32, #tpu.memory_space<vmem>>, vector<32x32xf32>,
    %15 = arith.truncf %13 : vector<32x16xf32> to vector<32x16xbf16>
    %c0_10 = arith.constant 0 : index
    %c0_11 = arith.constant 0 : index
    %16 = vector.load %arg6[%c0_10, %c0_11] : memref<32x16xbf16, #tpu.memory_space<vmem>>, vector<32x16xbf16>
    tpu.vector_store %arg6[%c0_10, %c0_11], %15 {strides = array<i32>} : memref<32x16xbf16, #tpu.memory_space<vmem>>, vector<32x16xbf16>,
    return
  }
  func.func @transform_0(%arg0: i32) -> (i32, i32) {
    %c0_i32 = arith.constant 0 : i32
    %c0_i32_0 = arith.constant 0 : i32
    return %arg0, %c0_i32 : i32, i32
  }
  func.func @transform_1(%arg0: i32) -> (i32, i32) {
    %c0_i32 = arith.constant 0 : i32
    %c0_i32_0 = arith.constant 0 : i32
    %c0_i32_1 = arith.constant 0 : i32
    return %c0_i32, %c0_i32_0 : i32, i32
  }
  func.func @transform_2(%arg0: i32) -> (i32, i32) {
    %c0_i32 = arith.constant 0 : i32
    %c0_i32_0 = arith.constant 0 : i32
    %c0_i32_1 = arith.constant 0 : i32
    return %c0_i32, %c0_i32_0 : i32, i32
  }
  func.func @transform_3(%arg0: i32) -> (i32, i32) {
    %c0_i32 = arith.constant 0 : i32
    %c0_i32_0 = arith.constant 0 : i32
    return %arg0, %c0_i32 : i32, i32
  }
  func.func @transform_4(%arg0: i32) -> (i32, i32) {
    %c0_i32 = arith.constant 0 : i32
    %c0_i32_0 = arith.constant 0 : i32
    return %arg0, %c0_i32 : i32, i32
  }
  func.func @transform_5(%arg0: i32) -> (i32, i32) {
    %c0_i32 = arith.constant 0 : i32
    %c0_i32_0 = arith.constant 0 : i32
    return %arg0, %c0_i32 : i32, i32
  }
}

module attributes {stable_mosaic.version = 11 : i64} {
  func.func @_matmul_bias_kernel(%arg0: i32, %arg1: memref<32x16xbf16, #tpu.memory_space<vmem>>, %arg2: memref<16x32xbf16, #tpu.memory_space<vmem>>, %arg3: memref<1x32xf32, #tpu.memory_space<vmem>>, %arg4: memref<32x32xbf16, #tpu.memory_space<vmem>>) attributes {dimension_semantics = [#tpu.dimension_semantics<parallel>], iteration_bounds = array<i64: 1>, scalar_prefetch = 0 : i64, scratch_operands = 0 : i64, tpu.core_type = #tpu.core_type<tc>, window_params = [{transform_indices = @transform_0, window_bounds = array<i64: 32, 16>}, {pipeline_mode = #tpu.pipeline_mode<synchronous>, transform_indices = @transform_1, window_bounds = array<i64: 16, 32>}, {pipeline_mode = #tpu.pipeline_mode<synchronous>, transform_indices = @transform_2, window_bounds = array<i64: 1, 32>}, {transform_indices = @transform_3, window_bounds = array<i64: 32, 32>}]} {
    %c0 = arith.constant 0 : index
    %c0_0 = arith.constant 0 : index
    %0 = vector.load %arg1[%c0, %c0_0] : memref<32x16xbf16, #tpu.memory_space<vmem>>, vector<32x16xbf16>
    %c0_1 = arith.constant 0 : index
    %c0_2 = arith.constant 0 : index
    %1 = vector.load %arg2[%c0_1, %c0_2] : memref<16x32xbf16, #tpu.memory_space<vmem>>, vector<16x32xbf16>
    %cst = arith.constant dense<0.000000e+00> : vector<32x32xf32>
    %2 = tpu.matmul %0, %1, %cst {dimension_numbers = #tpu.dot_dimension_numbers<[1], [0], [0], [1], [0, 0, 1, 1], [], []>} : vector<32x16xbf16>, vector<16x32xbf16>, vector<32x32xf32> -> vector<32x32xf32>
    %c0_3 = arith.constant 0 : index
    %c0_4 = arith.constant 0 : index
    %3 = vector.load %arg3[%c0_3, %c0_4] : memref<1x32xf32, #tpu.memory_space<vmem>>, vector<1x32xf32>
    %4 = vector.broadcast %3 : vector<1x32xf32> to vector<32x32xf32>
    %5 = arith.addf %2, %4 : vector<32x32xf32>
    %6 = arith.truncf %5 : vector<32x32xf32> to vector<32x32xbf16>
    %c0_5 = arith.constant 0 : index
    %c0_6 = arith.constant 0 : index
    %7 = vector.load %arg4[%c0_5, %c0_6] : memref<32x32xbf16, #tpu.memory_space<vmem>>, vector<32x32xbf16>
    tpu.vector_store %arg4[%c0_5, %c0_6], %6 {strides = array<i32>} : memref<32x32xbf16, #tpu.memory_space<vmem>>, vector<32x32xbf16>,
    return
  }
  func.func @transform_0(%arg0: i32) -> (i32, i32) {
    %c0_i32 = arith.constant 0 : i32
    %c0_i32_0 = arith.constant 0 : i32
    return %arg0, %c0_i32 : i32, i32
  }
  func.func @transform_1(%arg0: i32) -> (i32, i32) {
    %c0_i32 = arith.constant 0 : i32
    %c0_i32_0 = arith.constant 0 : i32
    %c0_i32_1 = arith.constant 0 : i32
    return %c0_i32, %c0_i32_0 : i32, i32
  }
  func.func @transform_2(%arg0: i32) -> (i32, i32) {
    %c0_i32 = arith.constant 0 : i32
    %c0_i32_0 = arith.constant 0 : i32
    %c0_i32_1 = arith.constant 0 : i32
    return %c0_i32, %c0_i32_0 : i32, i32
  }
  func.func @transform_3(%arg0: i32) -> (i32, i32) {
    %c0_i32 = arith.constant 0 : i32
    %c0_i32_0 = arith.constant 0 : i32
    return %arg0, %c0_i32 : i32, i32
  }
}

module attributes {stable_mosaic.version = 11 : i64} {
  func.func @_matmul_bias_kernel(%arg0: i32, %arg1: memref<128x8xbf16, #tpu.memory_space<vmem>>, %arg2: memref<8x16xbf16, #tpu.memory_space<vmem>>, %arg3: memref<1x16xf32, #tpu.memory_space<vmem>>, %arg4: memref<128x16xf32, #tpu.memory_space<vmem>>) attributes {dimension_semantics = [#tpu.dimension_semantics<parallel>], iteration_bounds = array<i64: 1>, scalar_prefetch = 0 : i64, scratch_operands = 0 : i64, tpu.core_type = #tpu.core_type<tc>, window_params = [{transform_indices = @transform_0, window_bounds = array<i64: 128, 8>}, {pipeline_mode = #tpu.pipeline_mode<synchronous>, transform_indices = @transform_1, window_bounds = array<i64: 8, 16>}, {pipeline_mode = #tpu.pipeline_mode<synchronous>, transform_indices = @transform_2, window_bounds = array<i64: 1, 16>}, {transform_indices = @transform_3, window_bounds = array<i64: 128, 16>}]} {
    %c0 = arith.constant 0 : index
    %c0_0 = arith.constant 0 : index
    %0 = vector.load %arg1[%c0, %c0_0] : memref<128x8xbf16, #tpu.memory_space<vmem>>, vector<128x8xbf16>
    %c0_1 = arith.constant 0 : index
    %c0_2 = arith.constant 0 : index
    %1 = vector.load %arg2[%c0_1, %c0_2] : memref<8x16xbf16, #tpu.memory_space<vmem>>, vector<8x16xbf16>
    %cst = arith.constant dense<0.000000e+00> : vector<128x16xf32>
    %2 = tpu.matmul %0, %1, %cst {dimension_numbers = #tpu.dot_dimension_numbers<[1], [0], [0], [1], [0, 0, 1, 1], [], []>} : vector<128x8xbf16>, vector<8x16xbf16>, vector<128x16xf32> -> vector<128x16xf32>
    %c0_3 = arith.constant 0 : index
    %c0_4 = arith.constant 0 : index
    %3 = vector.load %arg3[%c0_3, %c0_4] : memref<1x16xf32, #tpu.memory_space<vmem>>, vector<1x16xf32>
    %4 = vector.broadcast %3 : vector<1x16xf32> to vector<128x16xf32>
    %5 = arith.addf %2, %4 : vector<128x16xf32>
    %6 = arith.negf %5 : vector<128x16xf32>
    %7 = math.exp %6 : vector<128x16xf32>
    %cst_5 = arith.constant 1.000000e+00 : f32
    %8 = vector.broadcast %cst_5 : f32 to vector<128x16xf32>
    %9 = arith.addf %8, %7 : vector<128x16xf32>
    %10 = arith.divf %8, %9 : vector<128x16xf32>
    %c0_6 = arith.constant 0 : index
    %c0_7 = arith.constant 0 : index
    %11 = vector.load %arg4[%c0_6, %c0_7] : memref<128x16xf32, #tpu.memory_space<vmem>>, vector<128x16xf32>
    tpu.vector_store %arg4[%c0_6, %c0_7], %10 {strides = array<i32>} : memref<128x16xf32, #tpu.memory_space<vmem>>, vector<128x16xf32>,
    return
  }
  func.func @transform_0(%arg0: i32) -> (i32, i32) {
    %c0_i32 = arith.constant 0 : i32
    %c0_i32_0 = arith.constant 0 : i32
    return %arg0, %c0_i32 : i32, i32
  }
  func.func @transform_1(%arg0: i32) -> (i32, i32) {
    %c0_i32 = arith.constant 0 : i32
    %c0_i32_0 = arith.constant 0 : i32
    %c0_i32_1 = arith.constant 0 : i32
    return %c0_i32, %c0_i32_0 : i32, i32
  }
  func.func @transform_2(%arg0: i32) -> (i32, i32) {
    %c0_i32 = arith.constant 0 : i32
    %c0_i32_0 = arith.constant 0 : i32
    %c0_i32_1 = arith.constant 0 : i32
    return %c0_i32, %c0_i32_0 : i32, i32
  }
  func.func @transform_3(%arg0: i32) -> (i32, i32) {
    %c0_i32 = arith.constant 0 : i32
    %c0_i32_0 = arith.constant 0 : i32
    return %arg0, %c0_i32 : i32, i32
  }
}

</mosaic_0001>

<bundles_post_ra>
// kernel: vae_forward.17
= control target key start
LH: loop header
LB: loop body
LE: loop exit
PB: predicated region body
PF: predicated region fallthrough
CT: control target
= control target key end

     0   :  { %vm86_vm0 = vcmask 130048   ;;  %vm272_vm1 = vcmask 60416   ;;  %s503_s1 = inlined_call_operand.vmem [shape: bf16[16,8], index: 1, kind: input, shape index: {}]   ;;  %s504_s0 = inlined_call_operand.vmem [shape: bf16[128,16], index: 0, kind: input, shape index: {}]   ;;  %s505_s2 = inlined_call_operand.vmem [shape: f32[1,8], index: 2, kind: input, shape index: {}]   ;;  %s506_s3 = inlined_call_operand.vmem [shape: bf16[128,8], index: 3, kind: output, shape index: {}]  }
   0x1   :  { %v372_v0 = vld [vmem:[%s503_s1] sm:$0xff]   ;;  %v375_v3 = vld [vmem:[%s504_s0 + $0x8] sm:$0xff]   ;;  %v377_v5 = vld [vmem:[%s504_s0 + $0x10] sm:$0xff]  }
   0x2   :  { %v373_v1 = vld [vmem:[%s504_s0] sm:$0xff]   ;;  %352 = vmatprep.subr.bf16.mxu0 %v372_v0  ;;  %370 = vmatprep.subr.bf16.mxu1 %v372_v0  ;;  %v376_v4 = vld [vmem:[%s504_s0 + $0x28] sm:$0xff]   ;;  %v378_v6 = vld [vmem:[%s504_s0 + $0x30] sm:$0xff]  }
   0x3   :  { %v374_v2 = vld [vmem:[%s504_s0 + $0x20] sm:$0xff]   ;;  %353 = vmatpush3.bf16.msra.mxu0 %v372_v0  ;;  %371 = vmatpush3.bf16.msra.mxu1 %v372_v0  ;;  %v379_v7 = vld [vmem:[%s504_s0 + $0x18] sm:$0xff]  }
   0x4   :  { %354 = vmatprep.mubr.msk.bf16.mxu0 %vm86_vm0, %v373_v1  ;;  %362 = vmatprep.mubr.msk.bf16.mxu1 %vm86_vm0, %v374_v2  ;;  %v380_v8 = vld [vmem:[%s504_s0 + $0x38] sm:$0xff]   ;;  %v293_v9 = vld [vmem:[%s505_s2] ss:$0 sm:$0xff] }
   0x6   :  { %355 = vmatmul.mubr.msk.bf16.vlgmr.msra.gmra.mxu0 %vm86_vm0, %v375_v3  ;;  %363 = vmatmul.mubr.msk.bf16.vlgmr.msra.gmra.mxu1 %vm86_vm0, %v376_v4 }
   0x7   :  { %358 = vmatprep.mubr.msk.bf16.mxu0 %vm86_vm0, %v377_v5  ;;  %366 = vmatprep.mubr.msk.bf16.mxu1 %vm86_vm0, %v378_v6 }
   0xe   :  { %359 = vmatmul.mubr.msk.bf16.gmra.mxu0 %vm86_vm0, %v379_v7  ;;  %367 = vmatmul.mubr.msk.bf16.gmra.mxu1 %vm86_vm0, %v380_v8 }
  0xc6   :  { %v356_v10 = vpop.f32.mrf.mxu0  ;;  %v364_v11 = vpop.f32.mrf.mxu1 }
  0xc7   :  { %v154_v12 = vadd.f32 %v356_v10, %v293_v9  ;;  %v186_v13 = vadd.f32 %v364_v11, %v293_v9 }
  0xc8   :  { %v145_v14 = vpop.f32.mrf.mxu0  ;;  %v177_v15 = vpop.f32.mrf.mxu1 }
  0xc9   :  { %v329_v16 = vpack.c.bf16 %v154_v12, %v154_v12  ;;  %v337_v17 = vpack.c.bf16 %v186_v13, %v186_v13  ;;  %v146_v18 = vadd.f32 %v293_v9, %v145_v14  ;;  %v178_v19 = vadd.f32 %v293_v9, %v177_v15 }
  0xca   :  { %v357_v20 = vpop.f32.mrf.mxu0  ;;  %v365_v21 = vpop.f32.mrf.mxu1 }
  0xcb   :  { %275 = vst.msk [vmem:[%s506_s3 + $0x8] sm:$0xf] %vm272_vm1, %v329_v16  ;;  %283 = vst.msk [vmem:[%s506_s3 + $0x28] sm:$0xf] %vm272_vm1, %v337_v17  ;;  %v327_v22 = vpack.c.bf16 %v146_v18, %v146_v18  ;;  %v335_v23 = vpack.c.bf16 %v178_v19, %v178_v19  ;;  %v157_v24 = vadd.f32 %v357_v20, %v293_v9 }
  0xcc   :  { %v189_v25 = vadd.f32 %v365_v21, %v293_v9  ;;  %v148_v26 = vpop.f32.mrf.mxu0  ;;  %v180_v27 = vpop.f32.mrf.mxu1 }
  0xcd   :  { %273 = vst.msk [vmem:[%s506_s3] sm:$0xf] %vm272_vm1, %v327_v22  ;;  %281 = vst.msk [vmem:[%s506_s3 + $0x20] sm:$0xf] %vm272_vm1, %v335_v23  ;;  %v330_v28 = vpack.c.bf16 %v157_v24, %v157_v24  ;;  %v149_v30 = vadd.f32 %v293_v9, %v148_v26  ;;  %v181_v31 = vadd.f32 %v293_v9, %v180_v27 }
  0xce   :  { %v338_v29 = vpack.c.bf16 %v189_v25, %v189_v25  ;;  %v360_v32 = vpop.f32.mrf.mxu0  ;;  %v368_v33 = vpop.f32.mrf.mxu1 }
  0xcf   :  { %276 = vst.msk [vmem:[%s506_s3 + $0xc] sm:$0xf] %vm272_vm1, %v330_v28  ;;  %v328_v34 = vpack.c.bf16 %v149_v30, %v149_v30  ;;  %v336_v35 = vpack.c.bf16 %v181_v31, %v181_v31  ;;  %v170_v36 = vadd.f32 %v360_v32, %v293_v9  ;;  %v202_v37 = vadd.f32 %v368_v33, %v293_v9 }
  0xd0   :  { %284 = vst.msk [vmem:[%s506_s3 + $0x2c] sm:$0xf] %vm272_vm1, %v338_v29  ;;  %v161_v38 = vpop.f32.mrf.mxu0  ;;  %v193_v39 = vpop.f32.mrf.mxu1 }
  0xd1   :  { %274 = vst.msk [vmem:[%s506_s3 + $0x4] sm:$0xf] %vm272_vm1, %v328_v34  ;;  %282 = vst.msk [vmem:[%s506_s3 + $0x24] sm:$0xf] %vm272_vm1, %v336_v35  ;;  %v333_v40 = vpack.c.bf16 %v170_v36, %v170_v36  ;;  %v341_v41 = vpack.c.bf16 %v202_v37, %v202_v37  ;;  %v162_v42 = vadd.f32 %v293_v9, %v161_v38 }
  0xd2   :  { %v194_v43 = vadd.f32 %v293_v9, %v193_v39  ;;  %v361_v44 = vpop.f32.mrf.mxu0  ;;  %v369_v45 = vpop.f32.mrf.mxu1 }
  0xd3   :  { %279 = vst.msk [vmem:[%s506_s3 + $0x18] sm:$0xf] %vm272_vm1, %v333_v40  ;;  %287 = vst.msk [vmem:[%s506_s3 + $0x38] sm:$0xf] %vm272_vm1, %v341_v41  ;;  %v331_v46 = vpack.c.bf16 %v162_v42, %v162_v42  ;;  %v173_v48 = vadd.f32 %v361_v44, %v293_v9  ;;  %v205_v49 = vadd.f32 %v369_v45, %v293_v9 }
  0xd4   :  { %v339_v47 = vpack.c.bf16 %v194_v43, %v194_v43  ;;  %v164_v50 = vpop.f32.mrf.mxu0  ;;  %v196_v51 = vpop.f32.mrf.mxu1 }
  0xd5   :  { %277 = vst.msk [vmem:[%s506_s3 + $0x10] sm:$0xf] %vm272_vm1, %v331_v46  ;;  %v334_v52 = vpack.c.bf16 %v173_v48, %v173_v48  ;;  %v342_v53 = vpack.c.bf16 %v205_v49, %v205_v49  ;;  %v165_v54 = vadd.f32 %v293_v9, %v164_v50  ;;  %v197_v55 = vadd.f32 %v293_v9, %v196_v51 }
  0xd6   :  { %285 = vst.msk [vmem:[%s506_s3 + $0x30] sm:$0xf] %vm272_vm1, %v339_v47 }
  0xd7   :  { %280 = vst.msk [vmem:[%s506_s3 + $0x1c] sm:$0xf] %vm272_vm1, %v334_v52  ;;  %288 = vst.msk [vmem:[%s506_s3 + $0x3c] sm:$0xf] %vm272_vm1, %v342_v53  ;;  %v332_v56 = vpack.c.bf16 %v165_v54, %v165_v54  ;;  %v340_v57 = vpack.c.bf16 %v197_v55, %v197_v55 }
  0xd9   :  { %278 = vst.msk [vmem:[%s506_s3 + $0x14] sm:$0xf] %vm272_vm1, %v332_v56  ;;  %286 = vst.msk [vmem:[%s506_s3 + $0x34] sm:$0xf] %vm272_vm1, %v340_v57 }

// kernel: vae_forward.19
= control target key start
LH: loop header
LB: loop body
LE: loop exit
PB: predicated region body
PF: predicated region fallthrough
CT: control target
= control target key end

     0   :  { %s797_s21 = smov 0   ;;  %s799_s22 = smov 0   ;;  %s858_s0 = inlined_call_operand.vmem [shape: bf16[2,64,8], index: 0, kind: input, shape index: {}]   ;;  %s859_s1 = inlined_call_operand.vmem [shape: bf16[2,64,8], index: 1, kind: input, shape index: {}]   ;;  %s860_s2 = inlined_call_operand.vmem [shape: f32[1,1,8], index: 2, kind: input, shape index: {}]   ;;  %s861_s3 = inlined_call_operand.vmem [shape: f32[1,1,8], index: 3, kind: input, shape index: {}]   ;;  %s862_s4 = inlined_call_operand.vmem [shape: f32[2,1,128], index: 4, kind: input, shape index: {}]   ;;  %s863_s5 = inlined_call_operand.vmem [shape: f32[2,1,128], index: 5, kind: input, shape index: {}]   ;;  %s864_s6 = inlined_call_operand.vmem [shape: bf16[2,64,8], index: 6, kind: output, shape index: {}]  }
   0x1   :  { %s801_s23 = smov 0  }
   0x2 LB: > { %s28_s24 = sadd.s32 1, %s755_s22  ;;  %p636_p0 = scmp.ge.s32.totalorder %s759_s23, 1  ;;  %s759_s23 = sphi %s801_s23, %s16_s23   ;;  %s755_s22 = sphi %s799_s22, %s866_s22   ;;  %s751_s21 = sphi %s797_s21, %s865_s21  }
   0x3   : > { %p30_p1 = scmp.ge.s32.totalorder %s28_s24, 2  ;;  %p266_p2 = scmp.lt.s32.totalorder %s759_s23, 3 }
   0x5   : > { %s868_s24 = smov (%p30_p1, %s28_s24), 0  ;;  %p267_p3 = pnand %p636_p0, %p266_p2 }
   0x6   : > { %p320_p4 = scmp.lt.s32.totalorder (!%p267_p3), %s751_s21, 1  ;;  %s761_s17 = smov (!%p267_p3), 0.0  }
   0x7   : > { %270 = sbr.rel (%p267_p3) target bundleno = 156 (0x9c), region = 44 }
   0xc   : > { %s870_s21 = smov (!%p320_p4, %s751_s21), 1  ;;  %v643_v38 = vld [vmem:[%s860_s2] ss:$0 sm:$0xff]  ;;  %vm500_vm0 = vcmask 60416  }
   0xd   : > { %s341_s27 = scalar_lea.vmem %s862_s4, %s870_s21  ;;  %s344_s30 = scalar_lea.vmem %s863_s5, %s870_s21  ;;  %v644_v47 = vld [vmem:[%s861_s3] ss:$0 sm:$0xff] }
   0xe   : > { %v355_v0 = vld [vmem:[%s341_s27] sm:$0x1]  ;;  %s821_s7 = sshll.u32 %s870_s21, 5 }
   0xf   : > { %704 = vpush %v355_v0  ;;  %v360_v1 = vld [vmem:[%s344_s30] sm:$0x1]  ;;  %s327_s10 = scalar_lea.vmem %s858_s0, %s821_s7  ;;  %s337_s25 = scalar_lea.vmem %s859_s1, %s821_s7 }
  0x10   : > { %706 = vpush %v360_v1  ;;  %v667_v2 = vld [vmem:[%s327_s10] sm:$0xff]   ;;  %v698_v3 = vld [vmem:[%s327_s10 + $0x8] sm:$0xff]   ;;  %v699_v4 = vld [vmem:[%s327_s10 + $0x10] sm:$0xff]  }
  0x11   : > { %v700_v5 = vld [vmem:[%s327_s10 + $0x18] sm:$0xff]   ;;  %v668_v6 = vunpack.c.l.bf16 %v667_v2  ;;  %v669_v7 = vunpack.c.h.bf16 %v667_v2  ;;  %v672_v8 = vunpack.c.l.bf16 %v698_v3  ;;  %v673_v9 = vunpack.c.h.bf16 %v698_v3  ;;  %v683_v25 = vld [vmem:[%s337_s25] sm:$0xff]   ;;  %v701_v26 = vld [vmem:[%s337_s25 + $0x8] sm:$0xff]   ;;  %s353_s10 = scalar_lea.vmem %s864_s6, %s821_s7 }
  0x12   : > { %v676_v10 = vunpack.c.l.bf16 %v699_v4  ;;  %v677_v11 = vunpack.c.h.bf16 %v699_v4  ;;  %v680_v12 = vunpack.c.l.bf16 %v700_v5  ;;  %v681_v13 = vunpack.c.h.bf16 %v700_v5  ;;  %v702_v27 = vld [vmem:[%s337_s25 + $0x10] sm:$0xff]   ;;  %v703_v28 = vld [vmem:[%s337_s25 + $0x18] sm:$0xff]  }
  0x13   : > { %v684_v29 = vunpack.c.l.bf16 %v683_v25  ;;  %v685_v30 = vunpack.c.h.bf16 %v683_v25  ;;  %v688_v31 = vunpack.c.l.bf16 %v701_v26  ;;  %v689_v32 = vunpack.c.h.bf16 %v701_v26 }
  0x14   : > { %v692_v33 = vunpack.c.l.bf16 %v702_v27  ;;  %v693_v34 = vunpack.c.h.bf16 %v702_v27  ;;  %v696_v35 = vunpack.c.l.bf16 %v703_v28  ;;  %v697_v36 = vunpack.c.h.bf16 %v703_v28 }
  0x40   : > { %s705_s11 = spop %704 }
  0x41   : > { %s359_s12 = smul.f32 0.001953125, %s705_s11  ;;  %s707_s14 = spop %706 }
  0x42   : > { %s364_s15 = smul.f32 0.001953125, %s707_s14 }
  0x43   : > { %s365_s13 = smul.f32 %s359_s12, %s359_s12  ;;  %v388_v14 = vstv %s359_s12 }
  0x44   : > { %v389_v15 = vsub.f32 %v668_v6, %v388_v14  ;;  %v390_v16 = vsub.f32 %v669_v7, %v388_v14  ;;  %v391_v17 = vsub.f32 %v672_v8, %v388_v14  ;;  %v392_v18 = vsub.f32 %v673_v9, %v388_v14 }
  0x45   : > { %v393_v19 = vsub.f32 %v676_v10, %v388_v14  ;;  %v394_v20 = vsub.f32 %v677_v11, %v388_v14  ;;  %v395_v21 = vsub.f32 %v680_v12, %v388_v14  ;;  %v396_v22 = vsub.f32 %v681_v13, %v388_v14  ;;  %s366_s16 = ssub.f32 %s364_s15, %s365_s13 }
  0x47   : > { %s367_s18 = smax.f32 %s761_s17, %s366_s16 }
  0x48   : > { %s368_s19 = sadd.f32 1e-05, %s367_s18 }
  0x4a   : > { %v369_v23 = vstv %s368_s19 }
  0x4b   : > { %735 = vrsqrt.f32 %v369_v23 }
  0x58   : > { %v736_v24 = vpop.eup %735 }
  0x59   : > { %708 = vpush %v736_v24 }
  0x8a   : > { %s709_s26 = spop %708 }
  0x8b   : > { %v397_v37 = vstv %s709_s26 }
  0x8c   : > { %v398_v39 = vmul.f32 %v397_v37, %v389_v15  ;;  %v399_v40 = vmul.f32 %v397_v37, %v390_v16  ;;  %v400_v41 = vmul.f32 %v397_v37, %v391_v17  ;;  %v401_v42 = vmul.f32 %v397_v37, %v392_v18 }
  0x8d   : > { %v402_v43 = vmul.f32 %v397_v37, %v393_v19  ;;  %v403_v44 = vmul.f32 %v397_v37, %v394_v20  ;;  %v404_v45 = vmul.f32 %v397_v37, %v395_v21  ;;  %v405_v46 = vmul.f32 %v397_v37, %v396_v22 }
  0x8e   : > { %v413_v48 = vmul.f32 %v643_v38, %v398_v39  ;;  %v414_v49 = vmul.f32 %v643_v38, %v399_v40  ;;  %v415_v50 = vmul.f32 %v643_v38, %v400_v41  ;;  %v416_v51 = vmul.f32 %v643_v38, %v401_v42 }
  0x8f   : > { %v417_v52 = vmul.f32 %v643_v38, %v402_v43  ;;  %v418_v53 = vmul.f32 %v643_v38, %v403_v44  ;;  %v419_v54 = vmul.f32 %v643_v38, %v404_v45  ;;  %v420_v55 = vmul.f32 %v643_v38, %v405_v46 }
  0x90   : > { %v428_v56 = vadd.f32 %v644_v47, %v413_v48  ;;  %v429_v57 = vadd.f32 %v644_v47, %v414_v49  ;;  %v430_v58 = vadd.f32 %v644_v47, %v415_v50  ;;  %v431_v59 = vadd.f32 %v644_v47, %v416_v51 }
  0x91   : > { %v432_v60 = vadd.f32 %v644_v47, %v417_v52  ;;  %v433_v61 = vadd.f32 %v644_v47, %v418_v53  ;;  %v434_v62 = vadd.f32 %v644_v47, %v419_v54  ;;  %v435_v63 = vadd.f32 %v644_v47, %v420_v55 }
  0x92   : > { %v436_v0 = vmax.f32 %v428_v56, 0.0  ;;  %v437_v1 = vmax.f32 %v429_v57, 0.0  ;;  %v438_v2 = vmax.f32 %v430_v58, 0.0  ;;  %v439_v3 = vmax.f32 %v431_v59, 0.0 }
  0x93   : > { %v440_v4 = vmax.f32 %v432_v60, 0.0  ;;  %v441_v5 = vmax.f32 %v433_v61, 0.0  ;;  %v442_v6 = vmax.f32 %v434_v62, 0.0  ;;  %v443_v7 = vmax.f32 %v435_v63, 0.0 }
  0x94   : > { %v460_v8 = vadd.f32 %v684_v29, %v436_v0  ;;  %v461_v9 = vadd.f32 %v685_v30, %v437_v1  ;;  %v462_v10 = vadd.f32 %v688_v31, %v438_v2  ;;  %v463_v11 = vadd.f32 %v689_v32, %v439_v3 }
  0x95   : > { %v464_v12 = vadd.f32 %v692_v33, %v440_v4  ;;  %v465_v13 = vadd.f32 %v693_v34, %v441_v5  ;;  %v466_v14 = vadd.f32 %v696_v35, %v442_v6  ;;  %v467_v15 = vadd.f32 %v697_v36, %v443_v7 }
  0x96   : > { %v658_v16 = vpack.c.bf16 %v460_v8, %v460_v8  ;;  %v659_v17 = vpack.c.bf16 %v461_v9, %v461_v9  ;;  %v660_v18 = vpack.c.bf16 %v462_v10, %v462_v10  ;;  %v661_v19 = vpack.c.bf16 %v463_v11, %v463_v11 }
  0x97   : > { %v662_v20 = vpack.c.bf16 %v464_v12, %v464_v12  ;;  %v663_v21 = vpack.c.bf16 %v465_v13, %v465_v13  ;;  %v664_v22 = vpack.c.bf16 %v466_v14, %v466_v14  ;;  %v665_v23 = vpack.c.bf16 %v467_v15, %v467_v15 }
  0x98   : > { %501 = vst.msk [vmem:[%s353_s10] sm:$0xf] %vm500_vm0, %v658_v16  ;;  %502 = vst.msk [vmem:[%s353_s10 + $0x4] sm:$0xf] %vm500_vm0, %v659_v17 }
  0x99   : > { %503 = vst.msk [vmem:[%s353_s10 + $0x8] sm:$0xf] %vm500_vm0, %v660_v18  ;;  %504 = vst.msk [vmem:[%s353_s10 + $0xc] sm:$0xf] %vm500_vm0, %v661_v19 }
  0x9a   : > { %505 = vst.msk [vmem:[%s353_s10 + $0x10] sm:$0xf] %vm500_vm0, %v662_v20  ;;  %506 = vst.msk [vmem:[%s353_s10 + $0x14] sm:$0xf] %vm500_vm0, %v663_v21 }
  0x9b   : > { %507 = vst.msk [vmem:[%s353_s10 + $0x18] sm:$0xf] %vm500_vm0, %v664_v22  ;;  %508 = vst.msk [vmem:[%s353_s10 + $0x1c] sm:$0xf] %vm500_vm0, %v665_v23 }
  0x9c PF: > { %s16_s23 = sadd.s32 1, %s759_s23   ;;  %s865_s21 = smov %s755_s22 }
  0x9d   : > { %p13_p5 = scmp.ge.s32.totalorder %s16_s23, 4   ;;  %s866_s22 = smov %s868_s24 }
  0x9f   :  { %15 = sbr.rel (!%p13_p5) target bundleno = 2 (0x2), region = 83 }

// kernel: vae_forward.18
= control target key start
LH: loop header
LB: loop body
LE: loop exit
PB: predicated region body
PF: predicated region fallthrough
CT: control target
= control target key end

     0   :  { %s1011_s18 = smov 0   ;;  %s1139_s0 = inlined_call_operand.vmem [shape: bf16[2,80,24], index: 0, kind: input, shape index: {}]   ;;  %s1140_s1 = inlined_call_operand.vmem [shape: bf16[3,24,8], index: 1, kind: input, shape index: {}]   ;;  %s1141_s2 = inlined_call_operand.vmem [shape: f32[1,8], index: 2, kind: input, shape index: {}]   ;;  %s1142_s3 = inlined_call_operand.vmem [shape: bf16[2,64,8], index: 3, kind: output, shape index: {0}]   ;;  %s1143_s4 = inlined_call_operand.vmem [shape: f32[2,1,128], index: 4, kind: output, shape index: {1}]   ;;  %s1144_s5 = inlined_call_operand.vmem [shape: f32[2,1,128], index: 5, kind: output, shape index: {2}]  }
   0x1 LB: > { %s816_s19 = sadd.s32 4294967295, %s979_s18   ;;  %p820_p0 = scmp.ge.s32.totalorder %s979_s18, 1  ;;  %s979_s18 = sphi %s1011_s18, %s16_s18  }
   0x2   : > { %p192_p1 = scmp.lt.s32.totalorder %s979_s18, 3 }
   0x4   : > { %p193_p2 = pnand %p820_p0, %p192_p1 }
   0x5   : > { %p226_p3 = scmp.lt.s32.totalorder (!%p193_p2), %s816_s19, 1 }
   0x6   : > { %196 = sbr.rel (%p193_p2) target bundleno = 456 (0x1c8), region = 32 }
   0xb   : > { %v955_v0 = vld [vmem:[%s1140_s1 + $0x14] ss:$0 sps:$4 sm:$0xff]   ;;  %vm301_vm0 = vcmask 1043456   ;;  %v956_v1 = vld [vmem:[%s1140_s1 + $0xc] sm:$0xff]   ;;  %s1146_s19 = smov (!%p226_p3, %s816_s19), 1  ;;  %vm288_vm1 = vcmask 195584  }
   0xc   : > { %938 = vmatprep.subr.msk.bf16.mxu0 %vm301_vm0, %v955_v0  ;;  %939 = vmatprep.subr.msk.bf16.mxu1 %vm301_vm0, %v955_v0  ;;  %v303_v2 = vsel %vm301_vm0, %v955_v0, 0  ;;  %v966_v3 = vld [vmem:[%s1140_s1 + $0x20] ss:$0 sps:$4 sm:$0xff]   ;;  %v965_v4 = vld [vmem:[%s1140_s1 + $0x8] ss:$0 sps:$4 sm:$0xff]   ;;  %s942_s28 = smul.u32 40, %s1146_s19  ;;  %s238_s21 = scalar_lea.vmem %s1143_s4, %s1146_s19 }
   0xd   : > { %899 = vmatpush3.bf16.msra.mxu0 %v303_v2  ;;  %936 = vmatpush3.bf16.msra.mxu1 %v303_v2  ;;  %v519_v5 = vsel %vm301_vm0, %v966_v3, 0  ;;  %v968_v9 = vld [vmem:[%s1140_s1 + $0x18] sm:$0xff]   ;;  %v967_v21 = vld [vmem:[%s1140_s1] sm:$0xff]   ;;  %v398_v22 = vsel %vm301_vm0, %v965_v4, 0  ;;  %s871_s13 = sshll.u32 %s1146_s19, 5  ;;  %vm641_vm2 = vcmask 60416   ;;  %s241_s25 = scalar_lea.vmem %s1144_s5, %s1146_s19 }
   0xe   : > { %900 = vmatprep.subr.bf16.mxu0 %v956_v1  ;;  %935 = vmatprep.subr.bf16.mxu1 %v956_v1  ;;  %s1040_s6 = scalar_lea.vmem %s1139_s0, %s942_s28  ;;  %v1080_v42 = vld [vmem:[%s1141_s2] ss:$0 sm:$0xff]  ;;  %s1087_s16 = scalar_lea.vmem %s1142_s3, %s871_s13  ;;  %vm650_vm3 = vcmask 64512  }
   0xf   : > { %v243_v6 = vld [vmem:[%s1040_s6] sm:$0xf]  ;;  %v244_v7 = vld [vmem:[%s1040_s6 + $0x4] sm:$0xf]  ;;  %v245_v8 = vld [vmem:[%s1040_s6 + $0x8] sm:$0xf] }
  0x10   : > { %v246_v10 = vld [vmem:[%s1040_s6 + $0xc] sm:$0xf]  ;;  %v827_v11 = vcombine.low %v244_v7, %v245_v8  ;;  %v247_v12 = vld [vmem:[%s1040_s6 + $0x10] sm:$0xf]  ;;  %v248_v13 = vld [vmem:[%s1040_s6 + $0x14] sm:$0xf]  ;;  %v837_v18 = vcombine.low %v243_v6, %v244_v7 }
  0x11   : > { %901 = vmatpush3.bf16.msra.mxu0 %v956_v1  ;;  %937 = vmatpush3.bf16.msra.mxu1 %v956_v1  ;;  %v249_v14 = vld [vmem:[%s1040_s6 + $0x18] sm:$0xf]  ;;  %v250_v15 = vld [vmem:[%s1040_s6 + $0x1c] sm:$0xf]  ;;  %v254_v16 = vld [vmem:[%s1040_s6 + $0x20] sm:$0xf]  ;;  %v828_v17 = vcombine.low %v246_v10, %v247_v12  ;;  %v838_v26 = vcombine.low %v245_v8, %v246_v10  ;;  %v839_v27 = vcombine.low %v247_v12, %v248_v13 }
  0x12   : > { %940 = vmatprep.subr.msk.bf16.mxu1 %vm301_vm0, %v965_v4  ;;  %941 = vmatprep.subr.msk.bf16.mxu0 %vm301_vm0, %v966_v3  ;;  %v829_v19 = vcombine.low %v248_v13, %v249_v14  ;;  %v830_v20 = vcombine.low %v250_v15, %v254_v16  ;;  %v969_v23 = vld [vmem:[%s1040_s6 + $0x8] sm:$0xff]   ;;  %v970_v24 = vld [vmem:[%s1040_s6 + $0x10] sm:$0xff]   ;;  %v971_v25 = vld [vmem:[%s1040_s6 + $0x18] sm:$0xff]   ;;  %v840_v29 = vcombine.low %v249_v14, %v250_v15 }
  0x13   : > { %902 = vmatprep.mubr.msk.bf16.mxu0 %vm288_vm1, %v827_v11  ;;  %v972_v28 = vld [vmem:[%s1040_s6 + $0x20] sm:$0xff]  }
  0x14   : > { %903 = vmatmul.mubr.msk.bf16.vlgmr.msra.gmra.mxu0 %vm288_vm1, %v828_v17  ;;  %906 = vmatprep.mubr.msk.bf16.mxu1 %vm288_vm1, %v829_v19 }
  0x15   : > { %923 = vmatpush3.bf16.msra.mxu0 %v519_v5  ;;  %907 = vmatmul.mubr.msk.bf16.vlgmr.msra.gmra.mxu1 %vm288_vm1, %v830_v20 }
  0x16   : > { %924 = vmatprep.subr.bf16.mxu0 %v968_v9  ;;  %911 = vmatpush3.bf16.msra.mxu1 %v398_v22 }
  0x17   : > { %914 = vmatprep.mubr.msk.bf16.mxu1 %vm288_vm1, %v837_v18  ;;  %912 = vmatprep.subr.bf16.mxu1 %v967_v21 }
  0x18   : > { %926 = vmatprep.mubr.msk.bf16.mxu0 %vm288_vm1, %v969_v23 }
  0x19   : > { %925 = vmatpush3.bf16.msra.mxu0 %v968_v9 }
  0x1a   : > { %913 = vmatpush3.bf16.msra.mxu1 %v967_v21 }
  0x1c   : > { %927 = vmatmul.mubr.msk.bf16.vlgmr.msra.gmra.mxu0 %vm288_vm1, %v970_v24 }
  0x1d   : > { %930 = vmatprep.mubr.msk.bf16.mxu0 %vm288_vm1, %v971_v25  ;;  %915 = vmatmul.mubr.msk.bf16.vlgmr.msra.gmra.mxu1 %vm288_vm1, %v838_v26 }
  0x1e   : > { %918 = vmatprep.mubr.msk.bf16.mxu1 %vm288_vm1, %v839_v27 }
  0x24   : > { %931 = vmatmul.mubr.msk.bf16.gmra.mxu0 %vm288_vm1, %v972_v28 }
  0x25   : > { %919 = vmatmul.mubr.msk.bf16.gmra.mxu1 %vm288_vm1, %v840_v29 }
  0xd4   : > { %v904_v30 = vpop.f32.mrf.mxu0 }
  0xd5   : > { %v908_v31 = vpop.f32.mrf.mxu1 }
  0xd6   : > { %v339_v32 = vpop.f32.mrf.mxu0 }
  0xd7   : > { %v355_v33 = vpop.f32.mrf.mxu1 }
  0xd8   : > { %v905_v34 = vpop.f32.mrf.mxu0 }
  0xd9   : > { %v909_v35 = vpop.f32.mrf.mxu1 }
  0xda   : > { %v342_v36 = vpop.f32.mrf.mxu0 }
  0xdb   : > { %v358_v37 = vpop.f32.mrf.mxu1 }
  0xdc   : > { %v928_v38 = vpop.f32.mrf.mxu0 }
  0xdd   : > { %v916_v39 = vpop.f32.mrf.mxu1 }
  0xde   : > { %v555_v40 = vpop.f32.mrf.mxu0  ;;  %v443_v41 = vadd.f32 %v916_v39, %v904_v30 }
  0xdf   : > { %v434_v43 = vpop.f32.mrf.mxu1 }
  0xe0   : > { %v929_v44 = vpop.f32.mrf.mxu0  ;;  %v588_v45 = vadd.f32 %v928_v38, %v443_v41  ;;  %v435_v46 = vadd.f32 %v434_v43, %v339_v32 }
  0xe1   : > { %v917_v47 = vpop.f32.mrf.mxu1 }
  0xe2   : > { %v558_v48 = vpop.f32.mrf.mxu0  ;;  %v603_v49 = vadd.f32 %v1080_v42, %v588_v45  ;;  %v586_v50 = vadd.f32 %v555_v40, %v435_v46  ;;  %v446_v51 = vadd.f32 %v917_v47, %v905_v34 }
  0xe3   : > { %v437_v52 = vpop.f32.mrf.mxu1 }
  0xe4   : > { %v932_v53 = vpop.f32.mrf.mxu0  ;;  %v874_v54 = vpack.c.bf16 %v603_v49, %v603_v49  ;;  %v601_v55 = vadd.f32 %v1080_v42, %v586_v50  ;;  %v589_v56 = vadd.f32 %v929_v44, %v446_v51  ;;  %v438_v57 = vadd.f32 %v437_v52, %v342_v36 }
  0xe5   : > { %v920_v58 = vpop.f32.mrf.mxu1  ;;  %v654_v2 = vsel %vm650_vm3, %v603_v49, 0.0  ;;  %v679_v7 = vmul.f32 %v603_v49, %v603_v49 }
  0xe6   : > { %644 = vst.msk [vmem:[%s1087_s16 + $0x8] sm:$0xf] %vm641_vm2, %v874_v54  ;;  %v872_v59 = vpack.c.bf16 %v601_v55, %v601_v55  ;;  %v571_v60 = vpop.f32.mrf.mxu0  ;;  %v604_v61 = vadd.f32 %v1080_v42, %v589_v56  ;;  %v587_v62 = vadd.f32 %v558_v48, %v438_v57  ;;  %v459_v63 = vadd.f32 %v920_v58, %v908_v31 }
  0xe7   : > { %v450_v0 = vpop.f32.mrf.mxu1  ;;  %v677_v3 = vmul.f32 %v601_v55, %v601_v55  ;;  %v651_v12 = vsel %vm650_vm3, %v601_v55, 0.0  ;;  %v688_v30 = vsel %vm650_vm3, %v679_v7, 0.0 }
  0xe8   : > { %642 = vst.msk [vmem:[%s1087_s16] sm:$0xf] %vm641_vm2, %v872_v59  ;;  %v451_v1 = vadd.f32 %v450_v0, %v355_v33  ;;  %v875_v4 = vpack.c.bf16 %v604_v61, %v604_v61  ;;  %v602_v5 = vadd.f32 %v1080_v42, %v587_v62  ;;  %v592_v8 = vadd.f32 %v932_v53, %v459_v63  ;;  %v933_v11 = vpop.f32.mrf.mxu0 }
  0xe9   : > { %v921_v6 = vpop.f32.mrf.mxu1  ;;  %v685_v21 = vsel %vm650_vm3, %v677_v3, 0.0  ;;  %v680_v22 = vmul.f32 %v604_v61, %v604_v61  ;;  %v656_v34 = vsel %vm650_vm3, %v604_v61, 0.0 }
  0xea   : > { %v590_v9 = vadd.f32 %v571_v60, %v451_v1  ;;  %v462_v10 = vadd.f32 %v921_v6, %v909_v35  ;;  %645 = vst.msk [vmem:[%s1087_s16 + $0xc] sm:$0xf] %vm641_vm2, %v875_v4  ;;  %v873_v13 = vpack.c.bf16 %v602_v5, %v602_v5  ;;  %v652_v14 = vsel %vm650_vm3, %v602_v5, 0.0  ;;  %v574_v29 = vpop.f32.mrf.mxu0 }
  0xeb   : > { %v678_v15 = vmul.f32 %v602_v5, %v602_v5  ;;  %v453_v16 = vpop.f32.mrf.mxu1  ;;  %v653_v17 = vadd.f32 %v652_v14, %v651_v12  ;;  %v607_v18 = vadd.f32 %v1080_v42, %v592_v8  ;;  %v690_v36 = vsel %vm650_vm3, %v680_v22, 0.0 }
  0xec   : > { %v605_v19 = vadd.f32 %v1080_v42, %v590_v9  ;;  %v593_v20 = vadd.f32 %v933_v11, %v462_v10  ;;  %643 = vst.msk [vmem:[%s1087_s16 + $0x4] sm:$0xf] %vm641_vm2, %v873_v13  ;;  %v454_v24 = vadd.f32 %v453_v16, %v358_v37 }
  0xed   : > { %v686_v23 = vsel %vm650_vm3, %v678_v15, 0.0  ;;  %v878_v26 = vpack.c.bf16 %v607_v18, %v607_v18  ;;  %v655_v33 = vadd.f32 %v654_v2, %v653_v17  ;;  %v683_v48 = vmul.f32 %v607_v18, %v607_v18 }
  0xee   : > { %v687_v25 = vadd.f32 %v686_v23, %v685_v21  ;;  %v876_v27 = vpack.c.bf16 %v605_v19, %v605_v19  ;;  %v681_v28 = vmul.f32 %v605_v19, %v605_v19  ;;  %v608_v31 = vadd.f32 %v1080_v42, %v593_v20 }
  0xef   : > { %v591_v32 = vadd.f32 %v574_v29, %v454_v24  ;;  %648 = vst.msk [vmem:[%s1087_s16 + $0x18] sm:$0xf] %vm641_vm2, %v878_v26  ;;  %v657_v39 = vadd.f32 %v656_v34, %v655_v33  ;;  %v658_v40 = vsel %vm650_vm3, %v605_v19, 0.0  ;;  %v662_v51 = vsel %vm650_vm3, %v607_v18, 0.0 }
  0xf0   : > { %646 = vst.msk [vmem:[%s1087_s16 + $0x10] sm:$0xf] %vm641_vm2, %v876_v27  ;;  %v689_v35 = vadd.f32 %v688_v30, %v687_v25  ;;  %v879_v37 = vpack.c.bf16 %v608_v31, %v608_v31  ;;  %v692_v43 = vsel %vm650_vm3, %v681_v28, 0.0  ;;  %v664_v54 = vsel %vm650_vm3, %v608_v31, 0.0 }
  0xf1   : > { %v606_v38 = vadd.f32 %v1080_v42, %v591_v32  ;;  %v659_v46 = vadd.f32 %v658_v40, %v657_v39  ;;  %v684_v55 = vmul.f32 %v608_v31, %v608_v31  ;;  %v696_v56 = vsel %vm650_vm3, %v683_v48, 0.0 }
  0xf2   : > { %v691_v41 = vadd.f32 %v690_v36, %v689_v35  ;;  %649 = vst.msk [vmem:[%s1087_s16 + $0x1c] sm:$0xf] %vm641_vm2, %v879_v37 }
  0xf3   : > { %v877_v44 = vpack.c.bf16 %v606_v38, %v606_v38  ;;  %v682_v45 = vmul.f32 %v606_v38, %v606_v38  ;;  %v660_v47 = vsel %vm650_vm3, %v606_v38, 0.0  ;;  %v698_v59 = vsel %vm650_vm3, %v684_v55, 0.0 }
  0xf4   : > { %v693_v49 = vadd.f32 %v692_v43, %v691_v41  ;;  %v661_v50 = vadd.f32 %v660_v47, %v659_v46 }
  0xf5   : > { %647 = vst.msk [vmem:[%s1087_s16 + $0x14] sm:$0xf] %vm641_vm2, %v877_v44  ;;  %v694_v42 = vsel %vm650_vm3, %v682_v45, 0.0 }
  0xf6   : > { %v695_v52 = vadd.f32 %v694_v42, %v693_v49  ;;  %v663_v53 = vadd.f32 %v662_v51, %v661_v50 }
  0xf8   : > { %v665_v57 = vadd.f32 %v664_v54, %v663_v53  ;;  %v697_v58 = vadd.f32 %v696_v56, %v695_v52 }
  0xfa   : > { %666 = vadd.xlane.f32.xlu0 %v665_v57  ;;  %v699_v60 = vadd.f32 %v698_v59, %v697_v58 }
  0xfe   : > { %700 = vadd.xlane.f32.xlu0 %v699_v60 }
 0x183   : > { %v667_v61 = vpop.xlane.xlu0 %666 }
 0x184   : > { %v668_v62 = vrot.slane %v667_v61, 4 }
 0x186   : > { %v669_v63 = vadd.f32 %v668_v62, %v667_v61 }
 0x187   : > { %v701_v0 = vpop.xlane.xlu0 %700 }
 0x188   : > { %v670_v1 = vrot.slane %v669_v63, 2  ;;  %v702_v2 = vrot.slane %v701_v0, 4 }
 0x18a   : > { %v703_v3 = vadd.f32 %v702_v2, %v701_v0  ;;  %v671_v4 = vadd.f32 %v670_v1, %v669_v63 }
 0x18c   : > { %v704_v5 = vrot.slane %v703_v3, 2  ;;  %v672_v6 = vrot.slane %v671_v4, 1 }
 0x18e   : > { %v705_v7 = vadd.f32 %v704_v5, %v703_v3  ;;  %v673_v8 = vadd.f32 %v672_v6, %v671_v4 }
 0x190   : > { %943 = vpush %v673_v8  ;;  %v706_v9 = vrot.slane %v705_v7, 1 }
 0x192   : > { %v707_v10 = vadd.f32 %v706_v9, %v705_v7 }
 0x194   : > { %945 = vpush %v707_v10 }
 0x1c1   : > { %s944_s22 = spop %943 }
 0x1c2   : > { %v675_v11 = vstv %s944_s22 }
 0x1c3   : > { %676 = vst [vmem:[%s238_s21] sm:$0x1] %v675_v11 }
 0x1c5   : > { %s946_s26 = spop %945 }
 0x1c6   : > { %v709_v12 = vstv %s946_s26 }
 0x1c7   : > { %710 = vst [vmem:[%s241_s25] sm:$0x1] %v709_v12 }
 0x1c8 PF: > { %s16_s18 = sadd.s32 1, %s979_s18  }
 0x1c9   : > { %p13_p4 = scmp.ge.s32.totalorder %s16_s18, 4  }
 0x1cb   :  { %15 = sbr.rel (!%p13_p4) target bundleno = 1 (0x1), region = 88 }

// kernel: vae_forward.22
= control target key start
LH: loop header
LB: loop body
LE: loop exit
PB: predicated region body
PF: predicated region fallthrough
CT: control target
= control target key end

     0   :  { %vm52_vm0 = vcmask 261120   ;;  %vm124_vm1 = vcmask 125952   ;;  %s211_s1 = inlined_call_operand.vmem [shape: bf16[32,16], index: 1, kind: input, shape index: {}]   ;;  %s212_s0 = inlined_call_operand.vmem [shape: bf16[32,32], index: 0, kind: input, shape index: {}]   ;;  %s213_s2 = inlined_call_operand.vmem [shape: f32[1,16], index: 2, kind: input, shape index: {}]   ;;  %s214_s3 = inlined_call_operand.vmem [shape: bf16[32,16], index: 3, kind: output, shape index: {}]  }
   0x1   :  { %v160_v0 = vld [vmem:[%s211_s1 + $0x8] sm:$0xff]   ;;  %v161_v1 = vld [vmem:[%s211_s1] sm:$0xff]  }
   0x2   :  { %152 = vmatprep.subr.bf16.mxu0 %v160_v0  ;;  %v162_v2 = vld [vmem:[%s212_s0] sm:$0xff]   ;;  %v163_v3 = vld [vmem:[%s212_s0 + $0x8] sm:$0xff]  }
   0x3   :  { %153 = vmatpush3.bf16.msra.mxu0 %v160_v0  ;;  %156 = vmatprep.mubr.msk.bf16.mxu0 %vm52_vm0, %v162_v2  ;;  %v133_v4 = vld [vmem:[%s213_s2] ss:$0 sm:$0xff] }
   0x4   :  { %154 = vmatprep.subr.bf16.mxu0 %v161_v1 }
   0x7   :  { %155 = vmatpush3.bf16.msra.mxu0 %v161_v1 }
   0xa   :  { %157 = vmatmul.mubr.msk.bf16.vlgmr.msra.gmra.mxu0 %vm52_vm0, %v163_v3 }
  0xca   :  { %v158_v5 = vpop.f32.mrf.mxu0 }
  0xcb   :  { %v102_v6 = vadd.f32 %v158_v5, %v133_v4 }
  0xcc   :  { %v93_v7 = vpop.f32.mrf.mxu0 }
  0xcd   :  { %v146_v8 = vpack.c.bf16 %v102_v6, %v102_v6  ;;  %v94_v9 = vadd.f32 %v133_v4, %v93_v7 }
  0xce   :  { %v159_v10 = vpop.f32.mrf.mxu0 }
  0xcf   :  { %127 = vst.msk [vmem:[%s214_s3 + $0x8] sm:$0xf] %vm124_vm1, %v146_v8  ;;  %v144_v11 = vpack.c.bf16 %v94_v9, %v94_v9  ;;  %v105_v12 = vadd.f32 %v159_v10, %v133_v4 }
  0xd0   :  { %v96_v13 = vpop.f32.mrf.mxu0 }
  0xd1   :  { %125 = vst.msk [vmem:[%s214_s3] sm:$0xf] %vm124_vm1, %v144_v11  ;;  %v147_v14 = vpack.c.bf16 %v105_v12, %v105_v12  ;;  %v97_v15 = vadd.f32 %v133_v4, %v96_v13 }
  0xd3   :  { %128 = vst.msk [vmem:[%s214_s3 + $0xc] sm:$0xf] %vm124_vm1, %v147_v14  ;;  %v145_v16 = vpack.c.bf16 %v97_v15, %v97_v15 }
  0xd5   :  { %126 = vst.msk [vmem:[%s214_s3 + $0x4] sm:$0xf] %vm124_vm1, %v145_v16 }

// kernel: tile.10
= control target key start
LH: loop header
LB: loop body
LE: loop exit
PB: predicated region body
PF: predicated region fallthrough
CT: control target
= control target key end

     0   :  { %s22_s0 = inlined_call_operand.vmem [shape: f32[8], index: 0, kind: input, shape index: {}]   ;;  %s23_s1 = inlined_call_operand.vmem [shape: f32[4,8], index: 1, kind: output, shape index: {}]  }
   0x1   :  { %v4_v0 = vld [vmem:[%s22_s0] ss:$0 sm:$0xff] }
   0x2   :  { %5 = vst [vmem:[%s23_s1] sm:$0xf] %v4_v0 }

// kernel: vae_forward.23
= control target key start
LH: loop header
LB: loop body
LE: loop exit
PB: predicated region body
PF: predicated region fallthrough
CT: control target
= control target key end

     0   :  { %s785_s18 = smov 0   ;;  %s850_s0 = inlined_call_operand.vmem [shape: bf16[2,24,48], index: 0, kind: input, shape index: {}]   ;;  %s851_s1 = inlined_call_operand.vmem [shape: bf16[3,48,16], index: 1, kind: input, shape index: {}]   ;;  %s852_s2 = inlined_call_operand.vmem [shape: f32[1,16], index: 2, kind: input, shape index: {}]   ;;  %s853_s3 = inlined_call_operand.vmem [shape: bf16[2,16,16], index: 3, kind: output, shape index: {0}]   ;;  %s854_s4 = inlined_call_operand.vmem [shape: f32[2,1,128], index: 4, kind: output, shape index: {1}]   ;;  %s855_s5 = inlined_call_operand.vmem [shape: f32[2,1,128], index: 5, kind: output, shape index: {2}]  }
   0x1 LB: > { %s631_s19 = sadd.s32 4294967295, %s751_s18   ;;  %p635_p0 = scmp.ge.s32.totalorder %s751_s18, 1  ;;  %s751_s18 = sphi %s785_s18, %s16_s18  }
   0x2   : > { %p192_p1 = scmp.lt.s32.totalorder %s751_s18, 3 }
   0x4   : > { %p193_p2 = pnand %p635_p0, %p192_p1 }
   0x5   : > { %p226_p3 = scmp.lt.s32.totalorder (!%p193_p2), %s631_s19, 1 }
   0x6   : > { %196 = sbr.rel (%p193_p2) target bundleno = 446 (0x1be), region = 32 }
   0xb   : > { %v732_v0 = vld [vmem:[%s851_s1 + $0x28] sm:$0xff]   ;;  %v753_v1 = vmov 0.0   ;;  %v733_v2 = vld [vmem:[%s851_s1 + $0x10] sm:$0xff]   ;;  %v734_v3 = vld [vmem:[%s851_s1 + $0x20] sm:$0xff]   ;;  %vm754_vm0 = vmmov 0   ;;  %s857_s19 = smov (!%p226_p3, %s631_s19), 1 }
   0xc   : > { %687 = vmatprep.subr.bf16.mxu0 %v753_v1  ;;  %697 = vmatprep.subr.bf16.mxu1 %v753_v1  ;;  %v735_v4 = vld [vmem:[%s851_s1 + $0x8] sm:$0xff]   ;;  %v736_v5 = vld [vmem:[%s851_s1 + $0x18] sm:$0xff]   ;;  %s717_s30 = smul.u32 12, %s857_s19  ;;  %v737_v6 = vld [vmem:[%s851_s1] sm:$0xff]   ;;  %vm268_vm1 = vcmask 1045504   ;;  %vm290_vm2 = vcmask 392192   ;;  %s238_s27 = scalar_lea.vmem %s854_s4, %s857_s19 }
   0xd   : > { %688 = vmatpush3.bf16.msra.mxu0 %v732_v0  ;;  %693 = vmatprep.mubr.msk.bf16.mxu0 %vm754_vm0, %v753_v1  ;;  %v741_v15 = vld [vmem:[%s851_s1 + $0x40] sm:$0xff]   ;;  %v742_v17 = vld [vmem:[%s851_s1 + $0x38] sm:$0xff]   ;;  %v743_v18 = vld [vmem:[%s851_s1 + $0x30] sm:$0xff]   ;;  %s672_s21 = sshll.u32 %s857_s19, 3  ;;  %vm492_vm3 = vcmask 125952   ;;  %vm495_vm4 = vcmask 130048   ;;  %s241_s6 = scalar_lea.vmem %s855_s5, %s857_s19 }
   0xe   : > { %698 = vmatpush3.bf16.msra.mxu1 %v733_v2  ;;  %689 = vmatprep.subr.bf16.mxu0 %v753_v1  ;;  %s230_s10 = scalar_lea.vmem %s850_s0, %s717_s30  ;;  %v667_v31 = vld [vmem:[%s852_s2] ss:$0 sm:$0xff]  ;;  %s235_s24 = scalar_lea.vmem %s853_s3, %s672_s21 }
   0xf   : > { %699 = vmatprep.subr.bf16.mxu1 %v753_v1  ;;  %703 = vmatprep.mubr.msk.bf16.mxu1 %vm754_vm0, %v753_v1  ;;  %v244_v7 = vld [vmem:[%s230_s10 + $0x4] sm:$0xf]  ;;  %v251_v8 = vld [vmem:[%s230_s10] sm:$0xc]  ;;  %v400_v19 = vld [vmem:[%s230_s10 + $0x8] sm:$0xf] }
  0x10   : > { %v645_v9 = vcombine.low %v251_v8, %v244_v7  ;;  %v739_v10 = vld [vmem:[%s230_s10 + $0x8] ss:$0 sps:$4 sm:$0x33]   ;;  %v243_v11 = vld [vmem:[%s230_s10] sm:$0xf]  ;;  %v662_v20 = vcombine.low %v244_v7, %v400_v19 }
  0x11   : > { %690 = vmatpush3.bf16.msra.mxu0 %v734_v3  ;;  %v651_v12 = vcombine.low %v243_v11, %v244_v7  ;;  %v270_v14 = vrot.slane %v739_v10, 2 }
  0x12   : > { %700 = vmatpush3.bf16.msra.mxu1 %v735_v4  ;;  %691 = vmatprep.subr.bf16.mxu0 %v753_v1  ;;  %v269_v13 = vrot.slane %v645_v9, 2 }
  0x13   : > { %701 = vmatprep.subr.bf16.mxu1 %v753_v1 }
  0x14   : > { %v271_v16 = vsel %vm268_vm1, %v269_v13, %v270_v14 }
  0x15   : > { %692 = vmatpush3.bf16.msra.mxu0 %v736_v5 }
  0x16   : > { %702 = vmatpush3.bf16.msra.mxu1 %v737_v6  ;;  %707 = vmatprep.subr.bf16.mxu0 %v753_v1 }
  0x18   : > { %694 = vmatmul.mubr.msk.bf16.vlgmr.msra.gmra.mxu0 %vm290_vm2, %v271_v16 }
  0x19   : > { %704 = vmatmul.mubr.msk.bf16.vlgmr.msra.gmra.mxu1 %vm290_vm2, %v651_v12  ;;  %708 = vmatpush3.bf16.msra.mxu0 %v741_v15 }
  0x1a   : > { %713 = vmatprep.mubr.msk.bf16.mxu0 %vm754_vm0, %v753_v1  ;;  %709 = vmatprep.subr.bf16.mxu0 %v753_v1 }
  0x1d   : > { %710 = vmatpush3.bf16.msra.mxu0 %v742_v17 }
  0x1e   : > { %711 = vmatprep.subr.bf16.mxu0 %v753_v1 }
  0x21   : > { %712 = vmatpush3.bf16.msra.mxu0 %v743_v18 }
  0x24   : > { %714 = vmatmul.mubr.msk.bf16.vlgmr.msra.gmra.mxu0 %vm290_vm2, %v662_v20 }
  0xd8   : > { %v328_v22 = vpop.f32.mrf.mxu0 }
  0xd9   : > { %v393_v21 = vpop.f32.mrf.mxu1 }
  0xda   : > { %v695_v24 = vpop.f32.mrf.mxu0  ;;  %v394_v29 = vadd.f32 %v393_v21, %v328_v22 }
  0xdb   : > { %v705_v23 = vpop.f32.mrf.mxu1 }
  0xdc   : > { %v331_v26 = vpop.f32.mrf.mxu0 }
  0xdd   : > { %v396_v25 = vpop.f32.mrf.mxu1 }
  0xde   : > { %v696_v28 = vpop.f32.mrf.mxu0  ;;  %v397_v34 = vadd.f32 %v396_v25, %v331_v26 }
  0xdf   : > { %v706_v27 = vpop.f32.mrf.mxu1 }
  0xe4   : > { %v466_v30 = vpop.f32.mrf.mxu0 }
  0xe5   : > { %v473_v32 = vadd.f32 %v466_v30, %v394_v29 }
  0xe6   : > { %v715_v33 = vpop.f32.mrf.mxu0 }
  0xe7   : > { %v482_v35 = vadd.f32 %v667_v31, %v473_v32 }
  0xe8   : > { %v469_v36 = vpop.f32.mrf.mxu0 }
  0xe9   : > { %v673_v37 = vpack.c.bf16 %v482_v35, %v482_v35  ;;  %v474_v38 = vadd.f32 %v469_v36, %v397_v34  ;;  %v496_v41 = vsel %vm495_vm4, %v482_v35, 0.0  ;;  %v510_v44 = vmul.f32 %v482_v35, %v482_v35 }
  0xea   : > { %v716_v39 = vpop.f32.mrf.mxu0 }
  0xeb   : > { %493 = vst.msk [vmem:[%s235_s24] sm:$0xf] %vm492_vm3, %v673_v37  ;;  %v483_v40 = vadd.f32 %v667_v31, %v474_v38  ;;  %v512_v48 = vsel %vm495_vm4, %v510_v44, 0.0 }
  0xed   : > { %v674_v42 = vpack.c.bf16 %v483_v40, %v483_v40  ;;  %v497_v43 = vsel %vm495_vm4, %v483_v40, 0.0  ;;  %v511_v45 = vmul.f32 %v483_v40, %v483_v40 }
  0xee   : > { %v498_v46 = vadd.f32 %v497_v43, %v496_v41 }
  0xef   : > { %494 = vst.msk [vmem:[%s235_s24 + $0x4] sm:$0xf] %vm492_vm3, %v674_v42  ;;  %v513_v47 = vsel %vm495_vm4, %v511_v45, 0.0 }
  0xf0   : > { %499 = vadd.xlane.f32.xlu0 %v498_v46  ;;  %v514_v49 = vadd.f32 %v513_v47, %v512_v48 }
  0xf4   : > { %515 = vadd.xlane.f32.xlu0 %v514_v49 }
 0x179   : > { %v500_v50 = vpop.xlane.xlu0 %499 }
 0x17a   : > { %v501_v51 = vrot.slane %v500_v50, 4 }
 0x17c   : > { %v502_v52 = vadd.f32 %v501_v51, %v500_v50 }
 0x17d   : > { %v516_v53 = vpop.xlane.xlu0 %515 }
 0x17e   : > { %v503_v54 = vrot.slane %v502_v52, 2  ;;  %v517_v55 = vrot.slane %v516_v53, 4 }
 0x180   : > { %v518_v56 = vadd.f32 %v517_v55, %v516_v53  ;;  %v504_v57 = vadd.f32 %v503_v54, %v502_v52 }
 0x182   : > { %v519_v58 = vrot.slane %v518_v56, 2  ;;  %v505_v59 = vrot.slane %v504_v57, 1 }
 0x184   : > { %v520_v60 = vadd.f32 %v519_v58, %v518_v56  ;;  %v506_v61 = vadd.f32 %v505_v59, %v504_v57 }
 0x186   : > { %718 = vpush %v506_v61  ;;  %v521_v62 = vrot.slane %v520_v60, 1 }
 0x188   : > { %v522_v63 = vadd.f32 %v521_v62, %v520_v60 }
 0x18a   : > { %720 = vpush %v522_v63 }
 0x1b7   : > { %s719_s28 = spop %718 }
 0x1b8   : > { %v508_v0 = vstv %s719_s28 }
 0x1b9   : > { %509 = vst [vmem:[%s238_s27] sm:$0x1] %v508_v0 }
 0x1bb   : > { %s721_s7 = spop %720 }
 0x1bc   : > { %v524_v1 = vstv %s721_s7 }
 0x1bd   : > { %525 = vst [vmem:[%s241_s6] sm:$0x1] %v524_v1 }
 0x1be PF: > { %s16_s18 = sadd.s32 1, %s751_s18  }
 0x1bf   : > { %p13_p4 = scmp.ge.s32.totalorder %s16_s18, 4  }
 0x1c1   :  { %15 = sbr.rel (!%p13_p4) target bundleno = 1 (0x1), region = 88 }

// kernel: tile.11
= control target key start
LH: loop header
LB: loop body
LE: loop exit
PB: predicated region body
PF: predicated region fallthrough
CT: control target
= control target key end

     0   :  { %vm8_vm0 = vcmask 64512   ;;  %s40_s8 = smov 8   ;;  %s41_s9 = smov 16   ;;  %vm14_vm1 = vcmask 261312   ;;  %vm20_vm2 = vcmask 195712   ;;  %vm26_vm3 = vcmask 130112   ;;  %s58_s0 = inlined_call_operand.vmem [shape: f32[4,8], index: 0, kind: input, shape index: {}]   ;;  %s59_s1 = inlined_call_operand.vmem [shape: f32[1,32], index: 1, kind: output, shape index: {}]  }
   0x1   :  { %v5_v0 = vld [vmem:[%s58_s0] sm:$0xf]  ;;  %s39_s0 = smov 24  }
   0x2   :  { %6 = vst [vmem:[#allocation1] sm:$0xf] %v5_v0 }
   0x9   :  { %v11_v1 = vld [vmem:[#allocation1 + $0x3] sm:$0x1]   ;;  %v23_v2 = vld [vmem:[#allocation1 + $0x1] sm:$0x1]   ;;  %v7_v3 = vld [vmem:[#allocation1] sm:$0x1]  }
   0xa   :  { %12 = vrot.lane.b32.xlu0 %v11_v1, %s39_s0  ;;  %24 = vrot.lane.b32.xlu1 %v23_v2, %s40_s8  ;;  %v17_v4 = vld [vmem:[#allocation1 + $0x2] sm:$0x1]   ;;  %9 = vst.msk [vmem:[#allocation0] sm:$0x1] %vm8_vm0, %v7_v3  }
   0xe   :  { %18 = vrot.lane.b32.xlu0 %v17_v4, %s41_s9 }
  0x7c   :  { %v13_v5 = vpop.permute.xlu0 %12   ;;  %v25_v6 = vpop.permute.xlu1 %24  }
  0x7d   :  { %15 = vst.msk [vmem:[#allocation0] sm:$0x1] %vm14_vm1, %v13_v5  }
  0x80   :  { %v19_v7 = vpop.permute.xlu0 %18  }
  0x81   :  { %21 = vst.msk [vmem:[#allocation0] sm:$0x1] %vm20_vm2, %v19_v7  }
  0x82   :  { %27 = vst.msk [vmem:[#allocation0] sm:$0x1] %vm26_vm3, %v25_v6  }
  0x89   :  { %v32_v8 = vld [vmem:[#allocation0] sm:$0x1] }
  0x8a   :  { %35 = vst [vmem:[%s59_s1] sm:$0x1] %v32_v8 }

// kernel: vae_forward.24
= control target key start
LH: loop header
LB: loop body
LE: loop exit
PB: predicated region body
PF: predicated region fallthrough
CT: control target
= control target key end

     0   :  { %s665_s21 = smov 0   ;;  %s667_s22 = smov 0   ;;  %s718_s0 = inlined_call_operand.vmem [shape: bf16[2,16,16], index: 0, kind: input, shape index: {}]   ;;  %s719_s1 = inlined_call_operand.vmem [shape: bf16[2,16,16], index: 1, kind: input, shape index: {}]   ;;  %s720_s2 = inlined_call_operand.vmem [shape: f32[1,1,16], index: 2, kind: input, shape index: {}]   ;;  %s721_s3 = inlined_call_operand.vmem [shape: f32[1,1,16], index: 3, kind: input, shape index: {}]   ;;  %s722_s4 = inlined_call_operand.vmem [shape: f32[2,1,128], index: 4, kind: input, shape index: {}]   ;;  %s723_s5 = inlined_call_operand.vmem [shape: f32[2,1,128], index: 5, kind: input, shape index: {}]   ;;  %s724_s6 = inlined_call_operand.vmem [shape: bf16[2,16,16], index: 6, kind: output, shape index: {}]  }
   0x1   :  { %s669_s23 = smov 0  }
   0x2 LB: > { %s28_s24 = sadd.s32 1, %s623_s22  ;;  %p546_p0 = scmp.ge.s32.totalorder %s627_s23, 1  ;;  %s627_s23 = sphi %s669_s23, %s16_s23   ;;  %s623_s22 = sphi %s667_s22, %s726_s22   ;;  %s619_s21 = sphi %s665_s21, %s725_s21  }
   0x3   : > { %p30_p1 = scmp.ge.s32.totalorder %s28_s24, 2  ;;  %p266_p2 = scmp.lt.s32.totalorder %s627_s23, 3 }
   0x5   : > { %s728_s24 = smov (%p30_p1, %s28_s24), 0  ;;  %p267_p3 = pnand %p546_p0, %p266_p2 }
   0x6   : > { %p320_p4 = scmp.lt.s32.totalorder (!%p267_p3), %s619_s21, 1  ;;  %s629_s17 = smov (!%p267_p3), 0.0  }
   0x7   : > { %270 = sbr.rel (%p267_p3) target bundleno = 153 (0x99), region = 44 }
   0xc   : > { %s730_s21 = smov (!%p320_p4, %s619_s21), 1  ;;  %v553_v11 = vld [vmem:[%s720_s2] ss:$0 sm:$0xff]  ;;  %vm416_vm0 = vcmask 125952  }
   0xd   : > { %s341_s27 = scalar_lea.vmem %s722_s4, %s730_s21  ;;  %s344_s30 = scalar_lea.vmem %s723_s5, %s730_s21  ;;  %v554_v14 = vld [vmem:[%s721_s3] ss:$0 sm:$0xff] }
   0xe   : > { %v355_v0 = vld [vmem:[%s341_s27] sm:$0x1]  ;;  %s689_s7 = sshll.u32 %s730_s21, 3 }
   0xf   : > { %v360_v1 = vld [vmem:[%s344_s30] sm:$0x1]  ;;  %572 = vpush %v355_v0  ;;  %s327_s10 = scalar_lea.vmem %s718_s0, %s689_s7  ;;  %s337_s25 = scalar_lea.vmem %s719_s1, %s689_s7 }
  0x10   : > { %574 = vpush %v360_v1  ;;  %v565_v2 = vld [vmem:[%s327_s10] sm:$0xff]   ;;  %s353_s10 = scalar_lea.vmem %s724_s6, %s689_s7 }
  0x11   : > { %v566_v3 = vunpack.c.l.bf16 %v565_v2  ;;  %v567_v4 = vunpack.c.h.bf16 %v565_v2  ;;  %v569_v15 = vld [vmem:[%s337_s25] sm:$0xff]  }
  0x12   : > { %v570_v20 = vunpack.c.l.bf16 %v569_v15  ;;  %v571_v21 = vunpack.c.h.bf16 %v569_v15 }
  0x40   : > { %s573_s11 = spop %572 }
  0x41   : > { %s359_s12 = smul.f32 0.00390625, %s573_s11  ;;  %s575_s13 = spop %574 }
  0x42   : > { %s364_s14 = smul.f32 0.00390625, %s575_s13 }
  0x43   : > { %s365_s15 = smul.f32 %s359_s12, %s359_s12  ;;  %v376_v5 = vstv %s359_s12 }
  0x44   : > { %v377_v6 = vsub.f32 %v566_v3, %v376_v5  ;;  %v378_v7 = vsub.f32 %v567_v4, %v376_v5 }
  0x45   : > { %s366_s16 = ssub.f32 %s364_s14, %s365_s15 }
  0x47   : > { %s367_s18 = smax.f32 %s629_s17, %s366_s16 }
  0x48   : > { %s368_s19 = sadd.f32 1e-05, %s367_s18 }
  0x4a   : > { %v369_v8 = vstv %s368_s19 }
  0x4b   : > { %603 = vrsqrt.f32 %v369_v8 }
  0x58   : > { %v604_v9 = vpop.eup %603 }
  0x59   : > { %576 = vpush %v604_v9 }
  0x8a   : > { %s577_s26 = spop %576 }
  0x8b   : > { %v379_v10 = vstv %s577_s26 }
  0x8c   : > { %v380_v12 = vmul.f32 %v379_v10, %v377_v6  ;;  %v381_v13 = vmul.f32 %v379_v10, %v378_v7 }
  0x8e   : > { %v389_v16 = vmul.f32 %v553_v11, %v380_v12  ;;  %v390_v17 = vmul.f32 %v553_v11, %v381_v13 }
  0x90   : > { %v398_v18 = vadd.f32 %v554_v14, %v389_v16  ;;  %v399_v19 = vadd.f32 %v554_v14, %v390_v17 }
  0x92   : > { %v400_v22 = vmax.f32 %v398_v18, 0.0  ;;  %v401_v23 = vmax.f32 %v399_v19, 0.0 }
  0x94   : > { %v406_v24 = vadd.f32 %v570_v20, %v400_v22  ;;  %v407_v25 = vadd.f32 %v571_v21, %v401_v23 }
  0x96   : > { %v562_v26 = vpack.c.bf16 %v406_v24, %v406_v24  ;;  %v563_v27 = vpack.c.bf16 %v407_v25, %v407_v25 }
  0x98   : > { %417 = vst.msk [vmem:[%s353_s10] sm:$0xf] %vm416_vm0, %v562_v26  ;;  %418 = vst.msk [vmem:[%s353_s10 + $0x4] sm:$0xf] %vm416_vm0, %v563_v27 }
  0x99 PF: > { %s16_s23 = sadd.s32 1, %s627_s23   ;;  %s725_s21 = smov %s623_s22 }
  0x9a   : > { %p13_p5 = scmp.ge.s32.totalorder %s16_s23, 4   ;;  %s726_s22 = smov %s728_s24 }
  0x9c   :  { %15 = sbr.rel (!%p13_p5) target bundleno = 2 (0x2), region = 83 }

// kernel: tile.14
= control target key start
LH: loop header
LB: loop body
LE: loop exit
PB: predicated region body
PF: predicated region fallthrough
CT: control target
= control target key end

     0   :  { %s22_s0 = inlined_call_operand.vmem [shape: f32[4], index: 0, kind: input, shape index: {}]   ;;  %s23_s1 = inlined_call_operand.vmem [shape: f32[4,4], index: 1, kind: output, shape index: {}]  }
   0x1   :  { %v4_v0 = vld [vmem:[%s22_s0] ss:$0 sm:$0xff] }
   0x2   :  { %5 = vst [vmem:[%s23_s1] sm:$0xf] %v4_v0 }

// kernel: tile.15
= control target key start
LH: loop header
LB: loop body
LE: loop exit
PB: predicated region body
PF: predicated region fallthrough
CT: control target
= control target key end

     0   :  { %vm8_vm0 = vcmask 31744   ;;  %s40_s8 = smov 4   ;;  %s41_s9 = smov 8   ;;  %vm14_vm1 = vcmask 130144   ;;  %vm20_vm2 = vcmask 97344   ;;  %vm26_vm3 = vcmask 64544   ;;  %s58_s0 = inlined_call_operand.vmem [shape: f32[4,4], index: 0, kind: input, shape index: {}]   ;;  %s59_s1 = inlined_call_operand.vmem [shape: f32[1,16], index: 1, kind: output, shape index: {}]  }
   0x1   :  { %v5_v0 = vld [vmem:[%s58_s0] sm:$0xf]  ;;  %s39_s0 = smov 12  }
   0x2   :  { %6 = vst [vmem:[#allocation1] sm:$0xf] %v5_v0 }
   0x9   :  { %v11_v1 = vld [vmem:[#allocation1 + $0x3] sm:$0x1]   ;;  %v23_v2 = vld [vmem:[#allocation1 + $0x1] sm:$0x1]   ;;  %v7_v3 = vld [vmem:[#allocation1] sm:$0x1]  }
   0xa   :  { %12 = vrot.lane.b32.xlu0 %v11_v1, %s39_s0  ;;  %24 = vrot.lane.b32.xlu1 %v23_v2, %s40_s8  ;;  %v17_v4 = vld [vmem:[#allocation1 + $0x2] sm:$0x1]   ;;  %9 = vst.msk [vmem:[#allocation0] sm:$0x1] %vm8_vm0, %v7_v3  }
   0xe   :  { %18 = vrot.lane.b32.xlu0 %v17_v4, %s41_s9 }
  0x7c   :  { %v13_v5 = vpop.permute.xlu0 %12   ;;  %v25_v6 = vpop.permute.xlu1 %24  }
  0x7d   :  { %15 = vst.msk [vmem:[#allocation0] sm:$0x1] %vm14_vm1, %v13_v5  }
  0x80   :  { %v19_v7 = vpop.permute.xlu0 %18  }
  0x81   :  { %21 = vst.msk [vmem:[#allocation0] sm:$0x1] %vm20_vm2, %v19_v7  }
  0x82   :  { %27 = vst.msk [vmem:[#allocation0] sm:$0x1] %vm26_vm3, %v25_v6  }
  0x89   :  { %v32_v8 = vld [vmem:[#allocation0] sm:$0x1] }
  0x8a   :  { %35 = vst [vmem:[%s59_s1] sm:$0x1] %v32_v8 }

// kernel: vae_forward.25
= control target key start
LH: loop header
LB: loop body
LE: loop exit
PB: predicated region body
PF: predicated region fallthrough
CT: control target
= control target key end

     0   :  { %vm49_vm0 = vcmask 130048   ;;  %vm145_vm1 = vcmask 261120   ;;  %s214_s6 = smov 112   ;;  %vm166_vm2 = vcmask 125952   ;;  %s301_s1 = inlined_call_operand.vmem [shape: bf16[16,32], index: 1, kind: input, shape index: {}]   ;;  %s302_s0 = inlined_call_operand.vmem [shape: bf16[32,16], index: 0, kind: input, shape index: {}]   ;;  %s303_s2 = inlined_call_operand.vmem [shape: f32[1,32], index: 2, kind: input, shape index: {}]   ;;  %s304_s4 = inlined_call_operand.vmem [shape: f32[32,32], index: 4, kind: output, shape index: {0}]   ;;  %s305_s3 = inlined_call_operand.vmem [shape: f32[32,16], index: 3, kind: input, shape index: {}]   ;;  %s306_s5 = inlined_call_operand.vmem [shape: bf16[32,16], index: 5, kind: output, shape index: {1}]  }
   0x1   :  { %v203_v0 = vld [vmem:[%s301_s1] sm:$0xff]   ;;  %v205_v2 = vld [vmem:[%s302_s0 + $0x8] sm:$0xff]   ;;  %v107_v24 = vld [vmem:[%s305_s3 + $0x10] sm:$0xff] }
   0x2   :  { %v204_v1 = vld [vmem:[%s302_s0] sm:$0xff]   ;;  %196 = vmatprep.subr.bf16.mxu0 %v203_v0  ;;  %v108_v29 = vld [vmem:[%s305_s3 + $0x18] sm:$0xff]  ;;  %v106_v33 = vld [vmem:[%s305_s3 + $0x8] sm:$0xff] }
   0x3   :  { %197 = vmatpush3.bf16.msra.mxu0 %v203_v0  ;;  %198 = vmatprep.mubr.msk.bf16.mxu0 %vm49_vm0, %v204_v1  ;;  %v179_v3 = vld [vmem:[%s303_s2] ss:$0 sm:$0xff] }
   0x4   :  { %v105_v26 = vld [vmem:[%s305_s3] sm:$0xff] }
   0x6   :  { %199 = vmatmul.mubr.msk.bf16.vlgmr.msra.gmra.mxu0 %vm49_vm0, %v205_v2 }
  0xc6   :  { %v200_v4 = vpop.f32.mrf.mxu0 }
  0xc7   :  { %v99_v5 = vadd.f32 %v200_v4, %v179_v3 }
  0xc8   :  { %v90_v6 = vpop.f32.mrf.mxu0 }
  0xc9   :  { %v111_v7 = vmul.f32 0.5, %v99_v5  ;;  %148 = vst.msk [vmem:[%s304_s4 + $0x10] sm:$0xff] %vm145_vm1, %v99_v5  ;;  %v91_v8 = vadd.f32 %v179_v3, %v90_v6 }
  0xca   :  { %v201_v9 = vpop.f32.mrf.mxu0 }
  0xcb   :  { %v117_v10 = vmul.f32 1.442695, %v111_v7  ;;  %v109_v11 = vmul.f32 0.5, %v91_v8  ;;  %146 = vst.msk [vmem:[%s304_s4] sm:$0xff] %vm145_vm1, %v91_v8  ;;  %v102_v12 = vadd.f32 %v201_v9, %v179_v3 }
  0xcc   :  { %v93_v13 = vpop.f32.mrf.mxu0 }
  0xcd   :  { %206 = vpow2.f32 %v117_v10  ;;  %v113_v14 = vmul.f32 1.442695, %v109_v11  ;;  %v112_v15 = vmul.f32 0.5, %v102_v12  ;;  %149 = vst.msk [vmem:[%s304_s4 + $0x18] sm:$0xff] %vm145_vm1, %v102_v12  ;;  %v94_v16 = vadd.f32 %v179_v3, %v93_v13 }
  0xcf   :  { %208 = vpow2.f32 %v113_v14  ;;  %v119_v17 = vmul.f32 1.442695, %v112_v15  ;;  %v110_v18 = vmul.f32 0.5, %v94_v16  ;;  %147 = vst.msk [vmem:[%s304_s4 + $0x8] sm:$0xff] %vm145_vm1, %v94_v16 }
  0xd1   :  { %210 = vpow2.f32 %v119_v17  ;;  %v115_v19 = vmul.f32 1.442695, %v110_v18 }
  0xd3   :  { %212 = vpow2.f32 %v115_v19 }
  0xda   :  { %v207_v20 = vpop.eup %206 }
  0xdb   :  { %129 = vrot.lane.b32.xlu1 %v207_v20, %s214_s6 }
  0xdc   :  { %v209_v21 = vpop.eup %208 }
  0xdd   :  { %125 = vrot.lane.b32.xlu0 %v209_v21, %s214_s6 }
  0xde   :  { %v211_v22 = vpop.eup %210 }
  0xdf   :  { %131 = vrot.lane.b32.xlu1 %v211_v22, %s214_s6 }
  0xe0   :  { %v213_v23 = vpop.eup %212 }
  0xe1   :  { %127 = vrot.lane.b32.xlu0 %v213_v23, %s214_s6 }
 0x14d   :  { %v130_v25 = vpop.permute.xlu1 %129 }
 0x14e   :  { %v139_v27 = vmul.f32 %v130_v25, %v107_v24 }
 0x14f   :  { %v126_v28 = vpop.permute.xlu0 %125 }
 0x150   :  { %v143_v30 = vadd.f32 %v139_v27, %v99_v5  ;;  %v137_v31 = vmul.f32 %v126_v28, %v105_v26 }
 0x151   :  { %v132_v32 = vpop.permute.xlu1 %131 }
 0x152   :  { %v191_v34 = vpack.c.bf16 %v143_v30, %v143_v30  ;;  %v141_v35 = vadd.f32 %v137_v31, %v91_v8  ;;  %v140_v36 = vmul.f32 %v132_v32, %v108_v29 }
 0x153   :  { %v128_v37 = vpop.permute.xlu0 %127 }
 0x154   :  { %169 = vst.msk [vmem:[%s306_s5 + $0x8] sm:$0xf] %vm166_vm2, %v191_v34  ;;  %v189_v38 = vpack.c.bf16 %v141_v35, %v141_v35  ;;  %v144_v39 = vadd.f32 %v140_v36, %v102_v12  ;;  %v138_v40 = vmul.f32 %v128_v37, %v106_v33 }
 0x156   :  { %167 = vst.msk [vmem:[%s306_s5] sm:$0xf] %vm166_vm2, %v189_v38  ;;  %v192_v41 = vpack.c.bf16 %v144_v39, %v144_v39  ;;  %v142_v42 = vadd.f32 %v138_v40, %v94_v16 }
 0x158   :  { %170 = vst.msk [vmem:[%s306_s5 + $0xc] sm:$0xf] %vm166_vm2, %v192_v41  ;;  %v190_v43 = vpack.c.bf16 %v142_v42, %v142_v42 }
 0x15a   :  { %168 = vst.msk [vmem:[%s306_s5 + $0x4] sm:$0xf] %vm166_vm2, %v190_v43 }

// kernel: vae_forward.28
= control target key start
LH: loop header
LB: loop body
LE: loop exit
PB: predicated region body
PF: predicated region fallthrough
CT: control target
= control target key end

     0   :  { %vm44_vm0 = vcmask 130048   ;;  %vm116_vm1 = vcmask 257024   ;;  %s195_s1 = inlined_call_operand.vmem [shape: bf16[16,32], index: 1, kind: input, shape index: {}]   ;;  %s196_s0 = inlined_call_operand.vmem [shape: bf16[32,16], index: 0, kind: input, shape index: {}]   ;;  %s197_s2 = inlined_call_operand.vmem [shape: f32[1,32], index: 2, kind: input, shape index: {}]   ;;  %s198_s3 = inlined_call_operand.vmem [shape: bf16[32,32], index: 3, kind: output, shape index: {}]  }
   0x1   :  { %v148_v0 = vld [vmem:[%s195_s1] sm:$0xff]   ;;  %v150_v2 = vld [vmem:[%s196_s0 + $0x8] sm:$0xff]  }
   0x2   :  { %v149_v1 = vld [vmem:[%s196_s0] sm:$0xff]   ;;  %142 = vmatprep.subr.bf16.mxu0 %v148_v0 }
   0x3   :  { %143 = vmatpush3.bf16.msra.mxu0 %v148_v0  ;;  %144 = vmatprep.mubr.msk.bf16.mxu0 %vm44_vm0, %v149_v1  ;;  %v125_v3 = vld [vmem:[%s197_s2] ss:$0 sm:$0xff] }
   0x6   :  { %145 = vmatmul.mubr.msk.bf16.vlgmr.msra.gmra.mxu0 %vm44_vm0, %v150_v2 }
  0xc6   :  { %v146_v4 = vpop.f32.mrf.mxu0 }
  0xc7   :  { %v94_v5 = vadd.f32 %v146_v4, %v125_v3 }
  0xc8   :  { %v85_v6 = vpop.f32.mrf.mxu0 }
  0xc9   :  { %v137_v7 = vpack.c.bf16 %v94_v5, %v94_v5  ;;  %v86_v8 = vadd.f32 %v125_v3, %v85_v6 }
  0xca   :  { %v147_v9 = vpop.f32.mrf.mxu0 }
  0xcb   :  { %119 = vst.msk [vmem:[%s198_s3 + $0x8] sm:$0xf] %vm116_vm1, %v137_v7  ;;  %v135_v10 = vpack.c.bf16 %v86_v8, %v86_v8  ;;  %v97_v11 = vadd.f32 %v147_v9, %v125_v3 }
  0xcc   :  { %v88_v12 = vpop.f32.mrf.mxu0 }
  0xcd   :  { %117 = vst.msk [vmem:[%s198_s3] sm:$0xf] %vm116_vm1, %v135_v10  ;;  %v138_v13 = vpack.c.bf16 %v97_v11, %v97_v11  ;;  %v89_v14 = vadd.f32 %v125_v3, %v88_v12 }
  0xcf   :  { %120 = vst.msk [vmem:[%s198_s3 + $0xc] sm:$0xf] %vm116_vm1, %v138_v13  ;;  %v136_v15 = vpack.c.bf16 %v89_v14, %v89_v14 }
  0xd1   :  { %118 = vst.msk [vmem:[%s198_s3 + $0x4] sm:$0xf] %vm116_vm1, %v136_v15 }

// kernel: vae_forward.33
= control target key start
LH: loop header
LB: loop body
LE: loop exit
PB: predicated region body
PF: predicated region fallthrough
CT: control target
= control target key end

     0   :  { %vm104_vm0 = vcmask 1043456   ;;  %vm79_vm1 = vcmask 64512   ;;  %vm301_vm2 = vcmask 130048   ;;  %s580_s1 = inlined_call_operand.vmem [shape: bf16[8,16], index: 1, kind: input, shape index: {}]   ;;  %s581_s0 = inlined_call_operand.vmem [shape: bf16[128,8], index: 0, kind: input, shape index: {}]   ;;  %s582_s2 = inlined_call_operand.vmem [shape: f32[1,16], index: 2, kind: input, shape index: {}]   ;;  %s583_s3 = inlined_call_operand.vmem [shape: f32[128,16], index: 3, kind: output, shape index: {}]  }
   0x1   :  { %v31_v0 = vld [vmem:[%s580_s1] sm:$0xf]  ;;  %v388_v4 = vld [vmem:[%s581_s0 + $0x8] sm:$0xff]   ;;  %v390_v6 = vld [vmem:[%s581_s0 + $0x10] sm:$0xff]  }
   0x2   :  { %384 = vmatprep.subr.msk.bf16.mxu0 %vm104_vm0, %v31_v0  ;;  %385 = vmatprep.subr.msk.bf16.mxu1 %vm104_vm0, %v31_v0  ;;  %v106_v1 = vsel %vm104_vm0, %v31_v0, 0  ;;  %v386_v2 = vld [vmem:[%s581_s0] sm:$0xff]   ;;  %v389_v5 = vld [vmem:[%s581_s0 + $0x28] sm:$0xff]   ;;  %v391_v7 = vld [vmem:[%s581_s0 + $0x30] sm:$0xff]  }
   0x3   :  { %365 = vmatpush3.bf16.msra.mxu0 %v106_v1  ;;  %383 = vmatpush3.bf16.msra.mxu1 %v106_v1  ;;  %v387_v3 = vld [vmem:[%s581_s0 + $0x20] sm:$0xff]   ;;  %v392_v8 = vld [vmem:[%s581_s0 + $0x18] sm:$0xff]  }
   0x4   :  { %366 = vmatprep.mubr.msk.bf16.mxu0 %vm79_vm1, %v386_v2  ;;  %374 = vmatprep.mubr.msk.bf16.mxu1 %vm79_vm1, %v387_v3  ;;  %v393_v9 = vld [vmem:[%s581_s0 + $0x38] sm:$0xff]   ;;  %v322_v10 = vld [vmem:[%s582_s2] ss:$0 sm:$0xff] }
   0x6   :  { %367 = vmatmul.mubr.msk.bf16.vlgmr.msra.gmra.mxu0 %vm79_vm1, %v388_v4  ;;  %375 = vmatmul.mubr.msk.bf16.vlgmr.msra.gmra.mxu1 %vm79_vm1, %v389_v5 }
   0x7   :  { %370 = vmatprep.mubr.msk.bf16.mxu0 %vm79_vm1, %v390_v6  ;;  %378 = vmatprep.mubr.msk.bf16.mxu1 %vm79_vm1, %v391_v7 }
   0xe   :  { %371 = vmatmul.mubr.msk.bf16.gmra.mxu0 %vm79_vm1, %v392_v8  ;;  %379 = vmatmul.mubr.msk.bf16.gmra.mxu1 %vm79_vm1, %v393_v9 }
  0xc6   :  { %v368_v11 = vpop.f32.mrf.mxu0  ;;  %v376_v13 = vpop.f32.mrf.mxu1 }
  0xc7   :  { %v151_v12 = vadd.f32 %v368_v11, %v322_v10  ;;  %v183_v14 = vadd.f32 %v376_v13, %v322_v10 }
  0xc8   :  { %v142_v15 = vpop.f32.mrf.mxu0  ;;  %v174_v18 = vpop.f32.mrf.mxu1 }
  0xc9   :  { %v341_v16 = vmul.f32 -1.442695, %v151_v12  ;;  %v143_v17 = vadd.f32 %v322_v10, %v142_v15  ;;  %v349_v19 = vmul.f32 -1.442695, %v183_v14  ;;  %v175_v20 = vadd.f32 %v322_v10, %v174_v18 }
  0xca   :  { %v369_v21 = vpop.f32.mrf.mxu0  ;;  %v377_v24 = vpop.f32.mrf.mxu1 }
  0xcb   :  { %394 = vpow2.f32 %v341_v16  ;;  %v339_v22 = vmul.f32 -1.442695, %v143_v17  ;;  %v154_v23 = vadd.f32 %v369_v21, %v322_v10  ;;  %v347_v25 = vmul.f32 -1.442695, %v175_v20 }
  0xcc   :  { %396 = vpow2.f32 %v349_v19  ;;  %v186_v26 = vadd.f32 %v377_v24, %v322_v10  ;;  %v145_v27 = vpop.f32.mrf.mxu0  ;;  %v177_v30 = vpop.f32.mrf.mxu1 }
  0xcd   :  { %398 = vpow2.f32 %v339_v22  ;;  %v342_v28 = vmul.f32 -1.442695, %v154_v23  ;;  %v146_v29 = vadd.f32 %v322_v10, %v145_v27  ;;  %v178_v32 = vadd.f32 %v322_v10, %v177_v30 }
  0xce   :  { %400 = vpow2.f32 %v347_v25  ;;  %v350_v31 = vmul.f32 -1.442695, %v186_v26  ;;  %v372_v33 = vpop.f32.mrf.mxu0  ;;  %v380_v36 = vpop.f32.mrf.mxu1 }
  0xcf   :  { %402 = vpow2.f32 %v342_v28  ;;  %v340_v34 = vmul.f32 -1.442695, %v146_v29  ;;  %v167_v35 = vadd.f32 %v372_v33, %v322_v10  ;;  %v348_v37 = vmul.f32 -1.442695, %v178_v32 }
  0xd0   :  { %404 = vpow2.f32 %v350_v31  ;;  %v199_v38 = vadd.f32 %v380_v36, %v322_v10  ;;  %v158_v39 = vpop.f32.mrf.mxu0  ;;  %v190_v42 = vpop.f32.mrf.mxu1 }
  0xd1   :  { %406 = vpow2.f32 %v340_v34  ;;  %v345_v40 = vmul.f32 -1.442695, %v167_v35  ;;  %v159_v41 = vadd.f32 %v322_v10, %v158_v39  ;;  %v191_v44 = vadd.f32 %v322_v10, %v190_v42 }
  0xd2   :  { %408 = vpow2.f32 %v348_v37  ;;  %v353_v43 = vmul.f32 -1.442695, %v199_v38  ;;  %v373_v45 = vpop.f32.mrf.mxu0  ;;  %v381_v48 = vpop.f32.mrf.mxu1 }
  0xd3   :  { %410 = vpow2.f32 %v345_v40  ;;  %v343_v46 = vmul.f32 -1.442695, %v159_v41  ;;  %v170_v47 = vadd.f32 %v373_v45, %v322_v10  ;;  %v351_v49 = vmul.f32 -1.442695, %v191_v44 }
  0xd4   :  { %412 = vpow2.f32 %v353_v43  ;;  %v202_v50 = vadd.f32 %v381_v48, %v322_v10  ;;  %v161_v51 = vpop.f32.mrf.mxu0  ;;  %v193_v54 = vpop.f32.mrf.mxu1 }
  0xd5   :  { %414 = vpow2.f32 %v343_v46  ;;  %v346_v52 = vmul.f32 -1.442695, %v170_v47  ;;  %v162_v53 = vadd.f32 %v322_v10, %v161_v51  ;;  %v194_v56 = vadd.f32 %v322_v10, %v193_v54 }
  0xd6   :  { %416 = vpow2.f32 %v351_v49  ;;  %v354_v55 = vmul.f32 -1.442695, %v202_v50 }
  0xd7   :  { %418 = vpow2.f32 %v346_v52  ;;  %v344_v57 = vmul.f32 -1.442695, %v162_v53  ;;  %v352_v59 = vmul.f32 -1.442695, %v194_v56 }
  0xd8   :  { %v395_v58 = vpop.eup %394  ;;  %420 = vpow2.f32 %v354_v55 }
  0xd9   :  { %v397_v60 = vpop.eup %396  ;;  %v255_v61 = vadd.f32 1.0, %v395_v58  ;;  %422 = vpow2.f32 %v344_v57 }
  0xda   :  { %v399_v62 = vpop.eup %398  ;;  %v263_v63 = vadd.f32 1.0, %v397_v60  ;;  %424 = vpow2.f32 %v352_v59 }
  0xdb   :  { %v401_v0 = vpop.eup %400  ;;  %426 = vrcp.f32 %v255_v61  ;;  %v253_v1 = vadd.f32 1.0, %v399_v62 }
  0xdc   :  { %v403_v2 = vpop.eup %402  ;;  %428 = vrcp.f32 %v263_v63  ;;  %v261_v3 = vadd.f32 1.0, %v401_v0 }
  0xdd   :  { %v405_v4 = vpop.eup %404  ;;  %430 = vrcp.f32 %v253_v1  ;;  %v256_v5 = vadd.f32 1.0, %v403_v2 }
  0xde   :  { %v407_v6 = vpop.eup %406  ;;  %432 = vrcp.f32 %v261_v3  ;;  %v264_v7 = vadd.f32 1.0, %v405_v4 }
  0xdf   :  { %v409_v8 = vpop.eup %408  ;;  %434 = vrcp.f32 %v256_v5  ;;  %v254_v9 = vadd.f32 1.0, %v407_v6 }
  0xe0   :  { %v411_v10 = vpop.eup %410  ;;  %436 = vrcp.f32 %v264_v7  ;;  %v262_v11 = vadd.f32 1.0, %v409_v8 }
  0xe1   :  { %v413_v12 = vpop.eup %412  ;;  %438 = vrcp.f32 %v254_v9  ;;  %v259_v13 = vadd.f32 1.0, %v411_v10 }
  0xe2   :  { %v415_v14 = vpop.eup %414  ;;  %440 = vrcp.f32 %v262_v11  ;;  %v267_v15 = vadd.f32 1.0, %v413_v12 }
  0xe3   :  { %v417_v16 = vpop.eup %416  ;;  %442 = vrcp.f32 %v259_v13  ;;  %v257_v17 = vadd.f32 1.0, %v415_v14 }
  0xe4   :  { %v419_v18 = vpop.eup %418  ;;  %444 = vrcp.f32 %v267_v15  ;;  %v265_v19 = vadd.f32 1.0, %v417_v16 }
  0xe5   :  { %v421_v20 = vpop.eup %420  ;;  %446 = vrcp.f32 %v257_v17  ;;  %v260_v21 = vadd.f32 1.0, %v419_v18 }
  0xe6   :  { %v423_v22 = vpop.eup %422  ;;  %448 = vrcp.f32 %v265_v19  ;;  %v268_v23 = vadd.f32 1.0, %v421_v20 }
  0xe7   :  { %v425_v24 = vpop.eup %424  ;;  %450 = vrcp.f32 %v260_v21  ;;  %v258_v25 = vadd.f32 1.0, %v423_v22 }
  0xe8   :  { %v427_v26 = vpop.eup %426  ;;  %452 = vrcp.f32 %v268_v23  ;;  %v266_v27 = vadd.f32 1.0, %v425_v24 }
  0xe9   :  { %v429_v28 = vpop.eup %428  ;;  %304 = vst.msk [vmem:[%s583_s3 + $0x10] sm:$0xff] %vm301_vm2, %v427_v26  ;;  %454 = vrcp.f32 %v258_v25 }
  0xea   :  { %v431_v29 = vpop.eup %430  ;;  %312 = vst.msk [vmem:[%s583_s3 + $0x50] sm:$0xff] %vm301_vm2, %v429_v28  ;;  %456 = vrcp.f32 %v266_v27 }
  0xeb   :  { %v433_v30 = vpop.eup %432  ;;  %302 = vst.msk [vmem:[%s583_s3] sm:$0xff] %vm301_vm2, %v431_v29 }
  0xec   :  { %v435_v31 = vpop.eup %434  ;;  %310 = vst.msk [vmem:[%s583_s3 + $0x40] sm:$0xff] %vm301_vm2, %v433_v30 }
  0xed   :  { %v437_v32 = vpop.eup %436  ;;  %305 = vst.msk [vmem:[%s583_s3 + $0x18] sm:$0xff] %vm301_vm2, %v435_v31 }
  0xee   :  { %v439_v33 = vpop.eup %438  ;;  %313 = vst.msk [vmem:[%s583_s3 + $0x58] sm:$0xff] %vm301_vm2, %v437_v32 }
  0xef   :  { %v441_v34 = vpop.eup %440  ;;  %303 = vst.msk [vmem:[%s583_s3 + $0x8] sm:$0xff] %vm301_vm2, %v439_v33 }
  0xf0   :  { %v443_v35 = vpop.eup %442  ;;  %311 = vst.msk [vmem:[%s583_s3 + $0x48] sm:$0xff] %vm301_vm2, %v441_v34 }
  0xf1   :  { %v445_v36 = vpop.eup %444  ;;  %308 = vst.msk [vmem:[%s583_s3 + $0x30] sm:$0xff] %vm301_vm2, %v443_v35 }
  0xf2   :  { %v447_v37 = vpop.eup %446  ;;  %316 = vst.msk [vmem:[%s583_s3 + $0x70] sm:$0xff] %vm301_vm2, %v445_v36 }
  0xf3   :  { %v449_v38 = vpop.eup %448  ;;  %306 = vst.msk [vmem:[%s583_s3 + $0x20] sm:$0xff] %vm301_vm2, %v447_v37 }
  0xf4   :  { %v451_v39 = vpop.eup %450  ;;  %314 = vst.msk [vmem:[%s583_s3 + $0x60] sm:$0xff] %vm301_vm2, %v449_v38 }
  0xf5   :  { %v453_v40 = vpop.eup %452  ;;  %309 = vst.msk [vmem:[%s583_s3 + $0x38] sm:$0xff] %vm301_vm2, %v451_v39 }
  0xf6   :  { %v455_v41 = vpop.eup %454  ;;  %317 = vst.msk [vmem:[%s583_s3 + $0x78] sm:$0xff] %vm301_vm2, %v453_v40 }
  0xf7   :  { %v457_v42 = vpop.eup %456  ;;  %307 = vst.msk [vmem:[%s583_s3 + $0x28] sm:$0xff] %vm301_vm2, %v455_v41 }
  0xf8   :  { %315 = vst.msk [vmem:[%s583_s3 + $0x68] sm:$0xff] %vm301_vm2, %v457_v42 }

</bundles_post_ra>
